<compile_context>
chip_gen: v7x
topology: tpu7x:2x2x1
jax: 0.10.0
libtpu: 0.0.40
codegen_flags: <defaults>
</compile_context>

<pallas_src>
import functools

import jax
import jax.numpy as jnp
from jax import lax
from jax.experimental import pallas as pl
from jax.experimental.pallas import tpu as pltpu

CFG = dict(
    vocab_size=256,
    context_length=8,
    emb_dim=32,
    n_heads=4,
    n_layers=2,
    drop_rate=0.0,     # dropout p=0 -> identity (eval semantics)
    qkv_bias=False,
)


# ----------------------------- shared helpers ------------------------------

def _layernorm(x, scale, shift, eps=1e-5):
    mean = jnp.mean(x, axis=-1, keepdims=True)
    var = jnp.mean((x - mean) ** 2, axis=-1, keepdims=True)   # unbiased=False
    return scale * (x - mean) / jnp.sqrt(var + eps) + shift


def _gelu(x):
    c = jnp.sqrt(jnp.float32(2.0 / jnp.pi))
    return 0.5 * x * (1.0 + jnp.tanh(c * (x + 0.044715 * x * x * x)))


# --------------------------- fused forward kernel ---------------------------

def gpt_kernel(idx_ref, tok_emb_ref, pos_ref, bias_ref, qmask_ref, cmask_ref,
               wqkv_ref, wo_ref, bo_ref,
               w1_ref, b1_ref, w2_ref, b2_ref,
               n1s_ref, n1b_ref, n2s_ref, n2b_ref,
               fns_ref, fnb_ref, wout_ref,
               o_ref, *, num_heads, n_layers, batch, seq):
    BT = batch * seq
    V, D = tok_emb_ref.shape

    # Token embedding as an exact one-hot matmul (gather-free, MXU-friendly).
    vocab_ids = lax.broadcasted_iota(jnp.int32, (BT, V), 1)
    onehot = (vocab_ids == idx_ref[...]).astype(jnp.float32)          # (BT, V)
    x = jnp.dot(onehot, tok_emb_ref[...], preferred_element_type=jnp.float32)
    x = x + pos_ref[...]                       # pre-tiled (BT, D) positional emb
    # drop_emb: p = 0.0 -> identity

    bias = bias_ref[...]     # (H*BT, H*BT): 0 on same-(head,batch) causal entries, -1e30 elsewhere
    qmask = qmask_ref[...]   # (H*BT, D): per-row head lane mask * 1/sqrt(hd)
    cmask = cmask_ref[...]   # (H*BT, D): per-row head lane mask (0/1)

    def rep(t):
        # (BT, D) -> (num_heads*BT, D): head-replicate along sublanes
        # (leading-dim broadcast + leading-dim reshape -> no lane relayout).
        return jnp.broadcast_to(t[None], (num_heads, BT, D)).reshape(num_heads * BT, D)

    for l in range(n_layers):                  # static unroll; weights resident
        # ---- pre-norm multi-head causal attention (block-diagonal form) ----
        h = _layernorm(x, n1s_ref[l], n1b_ref[l])
        qkv = jnp.dot(h, wqkv_ref[l], preferred_element_type=jnp.float32)   # (BT, 3D)
        q = rep(qkv[:, 0 * D:1 * D]) * qmask    # head-lane select + 1/sqrt(hd), one mul
        k = rep(qkv[:, 1 * D:2 * D])
        v = rep(qkv[:, 2 * D:3 * D])

        # One score matmul over all (head, batch) blocks; K untransposed.
        s = lax.dot_general(q, k, (((1,), (1,)), ((), ())),
                            preferred_element_type=jnp.float32)             # (HBT, HBT)
        s = s + bias                            # causal + cross-head/batch blocking
        m = jnp.max(s, axis=-1, keepdims=True)
        e = jnp.exp(s - m)
        # Exact reciprocal (review: approx=True is the likely tolerance risk).
        p = e * (1.0 / jnp.sum(e, axis=-1, keepdims=True))

        ctx_rep = jnp.dot(p, v, preferred_element_type=jnp.float32) * cmask # (HBT, D)
        # Collapse head-replicated rows back to (BT, D): leading-axis sum only.
        ctx = ctx_rep.reshape(num_heads, BT, D).sum(axis=0)
        x = x + jnp.dot(ctx, wo_ref[l], preferred_element_type=jnp.float32) + bo_ref[l]

        # ---- pre-norm feed-forward ----
        h2 = _layernorm(x, n2s_ref[l], n2b_ref[l])
        ff = jnp.dot(h2, w1_ref[l], preferred_element_type=jnp.float32) + b1_ref[l]
        ff = _gelu(ff)
        ff = jnp.dot(ff, w2_ref[l], preferred_element_type=jnp.float32) + b2_ref[l]
        x = x + ff                              # residual (dropout p=0)

    # ---- final norm + LM head (lane-dense V=256 output store) ----
    hf = _layernorm(x, fns_ref[...], fnb_ref[...])
    o_ref[...] = jnp.dot(hf, wout_ref[...], preferred_element_type=jnp.float32)


def gpt_forward_pallas(params, in_idx, cfg):
    B, T = in_idx.shape
    V, D = cfg["vocab_size"], cfg["emb_dim"]
    nh, L = cfg["n_heads"], cfg["n_layers"]
    hd = D // nh
    BT = B * T
    HBT = nh * BT

    idx_col = in_idx.reshape(BT, 1).astype(jnp.int32)
    # Positional embedding pre-tiled to (BT, D) (hoisted out of the kernel).
    pos_tiled = jnp.tile(params["pos_emb"][:T], (B, 1))

    # Fused QKV weight: (L, D, 3D)  -> one projection matmul per layer.
    wqkv = jnp.concatenate([params["wq"], params["wk"], params["wv"]], axis=-1)

    # Block-diagonal additive attention bias over head-replicated rows.
    # Row ordering is (head, batch, token): r = h*BT + b*T + t.
    r = jnp.arange(HBT)
    h_of, b_of, t_of = r // BT, (r % BT) // T, r % T
    same_block = (h_of[:, None] == h_of[None, :]) & (b_of[:, None] == b_of[None, :])
    causal_ok = t_of[None, :] <= t_of[:, None]
    attn_bias = jnp.where(same_block & causal_ok, 0.0, -1e30).astype(jnp.float32)

    # Per-row head-lane masks: row r uses only head h_of[r]'s lanes.
    d = jnp.arange(D)
    head_mask = (d[None, :] // hd == h_of[:, None]).astype(jnp.float32)   # (HBT, D)
    qmask = head_mask * jnp.float32(1.0 / (hd ** 0.5))                    # fold 1/sqrt(hd)

    vmem = pl.BlockSpec(memory_space=pltpu.MemorySpace.VMEM)
    operands = (idx_col, params["tok_emb"], pos_tiled, attn_bias, qmask, head_mask,
                wqkv, params["wo"], params["bo"],
                params["w1"], params["b1"], params["w2"], params["b2"],
                params["n1s"], params["n1b"], params["n2s"], params["n2b"],
                params["fns"], params["fnb"], params["wout"])

    out = pl.pallas_call(
        functools.partial(gpt_kernel, num_heads=nh, n_layers=L, batch=B, seq=T),
        out_shape=jax.ShapeDtypeStruct((BT, V), jnp.float32),
        # No grid: single fused invocation; every operand is a whole VMEM block.
        in_specs=[vmem] * len(operands),
        out_specs=vmem,
        compiler_params=pltpu.CompilerParams(
            vmem_limit_bytes=32 * 1024 * 1024),   # explicit budget; usage ~250 KB
    )(*operands)
    return out.reshape(B, T, V)


# ------------------------------ parameters ----------------------------------

def init_params(key, cfg):
    D, V, C = cfg["emb_dim"], cfg["vocab_size"], cfg["context_length"]
    H, L = 4 * cfg["emb_dim"], cfg["n_layers"]
    ks = jax.random.split(key, 9)
    nrm = lambda k, shape: (0.02 * jax.random.normal(k, shape)).astype(jnp.float32)
    zeros = lambda shape: jnp.zeros(shape, jnp.float32)
    ones = lambda shape: jnp.ones(shape, jnp.float32)
    return dict(
        tok_emb=nrm(ks[0], (V, D)),
        pos_emb=nrm(ks[1], (C, D)),
        wout=nrm(ks[2], (D, V)),
        fns=ones((1, D)), fnb=zeros((1, D)),
        # per-layer weights stacked on a leading (L,) axis -> resident in VMEM
        wq=nrm(ks[3], (L, D, D)), wk=nrm(ks[4], (L, D, D)),
        wv=nrm(ks[5], (L, D, D)), wo=nrm(ks[6], (L, D, D)),
        bo=zeros((L, 1, D)),
        w1=nrm(ks[7], (L, D, H)), b1=zeros((L, 1, H)),
        w2=nrm(ks[8], (L, H, D)), b2=zeros((L, 1, D)),
        n1s=ones((L, 1, D)), n1b=zeros((L, 1, D)),
        n2s=ones((L, 1, D)), n2b=zeros((L, 1, D)),
    )


# ---------------------------- pure-JAX reference ----------------------------

def gpt_forward_ref(params, in_idx, cfg):
    B, T = in_idx.shape
    D, nh, L = cfg["emb_dim"], cfg["n_heads"], cfg["n_layers"]
    hd = D // nh
    x = jnp.take(params["tok_emb"], in_idx, axis=0) + params["pos_emb"][:T][None]
    mask = jnp.triu(jnp.ones((T, T), bool), k=1)
    for l in range(L):
        h = _layernorm(x, params["n1s"][l], params["n1b"][l])
        q = (h @ params["wq"][l]).reshape(B, T, nh, hd).transpose(0, 2, 1, 3)
        k = (h @ params["wk"][l]).reshape(B, T, nh, hd).transpose(0, 2, 1, 3)
        v = (h @ params["wv"][l]).reshape(B, T, nh, hd).transpose(0, 2, 1, 3)
        s = jnp.einsum("bhtd,bhsd->bhts", q, k)
        s = jnp.where(mask, -jnp.inf, s)
        p = jax.nn.softmax(s / jnp.sqrt(jnp.float32(hd)), axis=-1)
        ctx = jnp.einsum("bhts,bhsd->bhtd", p, v).transpose(0, 2, 1, 3).reshape(B, T, D)
        x = x + ctx @ params["wo"][l] + params["bo"][l]
        h2 = _layernorm(x, params["n2s"][l], params["n2b"][l])
        ff = _gelu(h2 @ params["w1"][l] + params["b1"][l]) @ params["w2"][l] + params["b2"][l]
        x = x + ff
    x = _layernorm(x, params["fns"], params["fnb"])
    return x @ params["wout"]


# ---------------------------------- main ------------------------------------

if __name__ == "__main__":
    key = jax.random.PRNGKey(0)
    pkey, ikey = jax.random.split(key)
    params = init_params(pkey, CFG)

    B, T = 2, CFG["context_length"]
    in_idx = jax.random.randint(ikey, (B, T), 0, CFG["vocab_size"], dtype=jnp.int32)

    logits = jax.block_until_ready(gpt_forward_pallas(params, in_idx, CFG))
    ref = gpt_forward_ref(params, in_idx, CFG)

    assert logits.shape == (B, T, CFG["vocab_size"])
    assert jnp.allclose(logits, ref, atol=1e-3, rtol=1e-3), "mismatch vs JAX reference"

    print("KERNEL_OK")
</pallas_src>

<mosaic_0001>
module attributes {stable_mosaic.version = 11 : i64} {
  func.func @gpt_kernel(%arg0: memref<16x1xi32, #tpu.memory_space<vmem>>, %arg1: memref<256x32xf32, #tpu.memory_space<vmem>>, %arg2: memref<16x32xf32, #tpu.memory_space<vmem>>, %arg3: memref<64x64xf32, #tpu.memory_space<vmem>>, %arg4: memref<64x32xf32, #tpu.memory_space<vmem>>, %arg5: memref<64x32xf32, #tpu.memory_space<vmem>>, %arg6: memref<2x32x96xf32, #tpu.memory_space<vmem>>, %arg7: memref<2x32x32xf32, #tpu.memory_space<vmem>>, %arg8: memref<2x1x32xf32, #tpu.memory_space<vmem>>, %arg9: memref<2x32x128xf32, #tpu.memory_space<vmem>>, %arg10: memref<2x1x128xf32, #tpu.memory_space<vmem>>, %arg11: memref<2x128x32xf32, #tpu.memory_space<vmem>>, %arg12: memref<2x1x32xf32, #tpu.memory_space<vmem>>, %arg13: memref<2x1x32xf32, #tpu.memory_space<vmem>>, %arg14: memref<2x1x32xf32, #tpu.memory_space<vmem>>, %arg15: memref<2x1x32xf32, #tpu.memory_space<vmem>>, %arg16: memref<2x1x32xf32, #tpu.memory_space<vmem>>, %arg17: memref<1x32xf32, #tpu.memory_space<vmem>>, %arg18: memref<1x32xf32, #tpu.memory_space<vmem>>, %arg19: memref<32x256xf32, #tpu.memory_space<vmem>>, %arg20: memref<16x256xf32, #tpu.memory_space<vmem>>) attributes {dimension_semantics = [], scalar_prefetch = 0 : i64, scratch_operands = 0 : i64, tpu.core_type = #tpu.core_type<tc>} {
    %0 = tpu.iota {dimensions = array<i32: 1>} : vector<16x256xi32>
    %c0 = arith.constant 0 : index
    %c0_0 = arith.constant 0 : index
    %1 = vector.load %arg0[%c0, %c0_0] : memref<16x1xi32, #tpu.memory_space<vmem>>, vector<16x1xi32>
    %2 = vector.broadcast %1 : vector<16x1xi32> to vector<16x256xi32>
    %3 = arith.cmpi eq, %0, %2 : vector<16x256xi32>
    %4 = arith.extui %3 : vector<16x256xi1> to vector<16x256xi32>
    %5 = arith.sitofp %4 : vector<16x256xi32> to vector<16x256xf32>
    %c0_1 = arith.constant 0 : index
    %c0_2 = arith.constant 0 : index
    %6 = vector.load %arg1[%c0_1, %c0_2] : memref<256x32xf32, #tpu.memory_space<vmem>>, vector<256x32xf32>
    %cst = arith.constant dense<0.000000e+00> : vector<16x32xf32>
    %7 = tpu.matmul %5, %6, %cst {dimension_numbers = #tpu.dot_dimension_numbers<[1], [0], [0], [1], [0, 0, 1, 1], [], []>} : vector<16x256xf32>, vector<256x32xf32>, vector<16x32xf32> -> vector<16x32xf32>
    %c0_3 = arith.constant 0 : index
    %c0_4 = arith.constant 0 : index
    %8 = vector.load %arg2[%c0_3, %c0_4] : memref<16x32xf32, #tpu.memory_space<vmem>>, vector<16x32xf32>
    %9 = arith.addf %7, %8 : vector<16x32xf32>
    %c0_5 = arith.constant 0 : index
    %c0_6 = arith.constant 0 : index
    %10 = vector.load %arg3[%c0_5, %c0_6] : memref<64x64xf32, #tpu.memory_space<vmem>>, vector<64x64xf32>
    %c0_7 = arith.constant 0 : index
    %c0_8 = arith.constant 0 : index
    %11 = vector.load %arg4[%c0_7, %c0_8] : memref<64x32xf32, #tpu.memory_space<vmem>>, vector<64x32xf32>
    %c0_9 = arith.constant 0 : index
    %c0_10 = arith.constant 0 : index
    %12 = vector.load %arg5[%c0_9, %c0_10] : memref<64x32xf32, #tpu.memory_space<vmem>>, vector<64x32xf32>
    %c0_11 = arith.constant 0 : index
    %c0_12 = arith.constant 0 : index
    %c0_13 = arith.constant 0 : index
    %13 = vector.load %arg13[%c0_11, %c0_12, %c0_13] : memref<2x1x32xf32, #tpu.memory_space<vmem>>, vector<1x1x32xf32>
    %14 = vector.shape_cast %13 : vector<1x1x32xf32> to vector<1x32xf32>
    %c0_14 = arith.constant 0 : index
    %c0_15 = arith.constant 0 : index
    %c0_16 = arith.constant 0 : index
    %15 = vector.load %arg14[%c0_14, %c0_15, %c0_16] : memref<2x1x32xf32, #tpu.memory_space<vmem>>, vector<1x1x32xf32>
    %16 = vector.shape_cast %15 : vector<1x1x32xf32> to vector<1x32xf32>
    %cst_17 = arith.constant dense<0.000000e+00> : vector<16xf32>
    %17 = vector.multi_reduction <add>, %9, %cst_17 [1] : vector<16x32xf32> to vector<16xf32>
    %18 = vector.shape_cast %17 : vector<16xf32> to vector<16x1xf32>
    %cst_18 = arith.constant 3.200000e+01 : f32
    %19 = vector.broadcast %cst_18 : f32 to vector<16x1xf32>
    %20 = arith.divf %18, %19 : vector<16x1xf32>
    %21 = vector.broadcast %20 : vector<16x1xf32> to vector<16x32xf32>
    %22 = arith.subf %9, %21 : vector<16x32xf32>
    %23 = arith.mulf %22, %22 : vector<16x32xf32>
    %cst_19 = arith.constant dense<0.000000e+00> : vector<16xf32>
    %24 = vector.multi_reduction <add>, %23, %cst_19 [1] : vector<16x32xf32> to vector<16xf32>
    %25 = vector.shape_cast %24 : vector<16xf32> to vector<16x1xf32>
    %cst_20 = arith.constant 3.200000e+01 : f32
    %26 = vector.broadcast %cst_20 : f32 to vector<16x1xf32>
    %27 = arith.divf %25, %26 : vector<16x1xf32>
    %28 = vector.broadcast %20 : vector<16x1xf32> to vector<16x32xf32>
    %29 = arith.subf %9, %28 : vector<16x32xf32>
    %30 = vector.broadcast %14 : vector<1x32xf32> to vector<16x32xf32>
    %31 = arith.mulf %30, %29 : vector<16x32xf32>
    %cst_21 = arith.constant 9.99999974E-6 : f32
    %32 = vector.broadcast %cst_21 : f32 to vector<16x1xf32>
    %33 = arith.addf %27, %32 : vector<16x1xf32>
    %34 = math.sqrt %33 : vector<16x1xf32>
    %35 = vector.broadcast %34 : vector<16x1xf32> to vector<16x32xf32>
    %36 = arith.divf %31, %35 : vector<16x32xf32>
    %37 = vector.broadcast %16 : vector<1x32xf32> to vector<16x32xf32>
    %38 = arith.addf %36, %37 : vector<16x32xf32>
    %c0_22 = arith.constant 0 : index
    %c0_23 = arith.constant 0 : index
    %c0_24 = arith.constant 0 : index
    %39 = vector.load %arg6[%c0_22, %c0_23, %c0_24] : memref<2x32x96xf32, #tpu.memory_space<vmem>>, vector<1x32x96xf32>
    %40 = vector.shape_cast %39 : vector<1x32x96xf32> to vector<32x96xf32>
    %cst_25 = arith.constant dense<0.000000e+00> : vector<16x96xf32>
    %41 = tpu.matmul %38, %40, %cst_25 {dimension_numbers = #tpu.dot_dimension_numbers<[1], [0], [0], [1], [0, 0, 1, 1], [], []>} : vector<16x32xf32>, vector<32x96xf32>, vector<16x96xf32> -> vector<16x96xf32>
    %42 = vector.extract_strided_slice %41 {offsets = [0, 0], sizes = [16, 32], strides = [1, 1]} : vector<16x96xf32> to vector<16x32xf32>
    %43 = vector.shape_cast %42 : vector<16x32xf32> to vector<1x16x32xf32>
    %44 = vector.shape_cast %43 : vector<1x16x32xf32> to vector<1x16x32xf32>
    %45 = vector.broadcast %44 : vector<1x16x32xf32> to vector<4x16x32xf32>
    %46 = vector.shape_cast %45 : vector<4x16x32xf32> to vector<64x32xf32>
    %47 = arith.mulf %46, %11 : vector<64x32xf32>
    %48 = vector.extract_strided_slice %41 {offsets = [0, 32], sizes = [16, 32], strides = [1, 1]} : vector<16x96xf32> to vector<16x32xf32>
    %49 = vector.shape_cast %48 : vector<16x32xf32> to vector<1x16x32xf32>
    %50 = vector.shape_cast %49 : vector<1x16x32xf32> to vector<1x16x32xf32>
    %51 = vector.broadcast %50 : vector<1x16x32xf32> to vector<4x16x32xf32>
    %52 = vector.shape_cast %51 : vector<4x16x32xf32> to vector<64x32xf32>
    %53 = vector.extract_strided_slice %41 {offsets = [0, 64], sizes = [16, 32], strides = [1, 1]} : vector<16x96xf32> to vector<16x32xf32>
    %54 = vector.shape_cast %53 : vector<16x32xf32> to vector<1x16x32xf32>
    %55 = vector.shape_cast %54 : vector<1x16x32xf32> to vector<1x16x32xf32>
    %56 = vector.broadcast %55 : vector<1x16x32xf32> to vector<4x16x32xf32>
    %57 = vector.shape_cast %56 : vector<4x16x32xf32> to vector<64x32xf32>
    %cst_26 = arith.constant dense<0.000000e+00> : vector<64x64xf32>
    %58 = tpu.matmul %47, %52, %cst_26 {dimension_numbers = #tpu.dot_dimension_numbers<[1], [1], [0], [0], [0, 0, 1, 0], [], []>} : vector<64x32xf32>, vector<64x32xf32>, vector<64x64xf32> -> vector<64x64xf32>
    %59 = arith.addf %58, %10 : vector<64x64xf32>
    %cst_27 = arith.constant dense<0xFF800000> : vector<64xf32>
    %60 = vector.multi_reduction <maximumf>, %59, %cst_27 [1] : vector<64x64xf32> to vector<64xf32>
    %61 = vector.shape_cast %60 : vector<64xf32> to vector<64x1xf32>
    %62 = vector.broadcast %61 : vector<64x1xf32> to vector<64x64xf32>
    %63 = arith.subf %59, %62 : vector<64x64xf32>
    %64 = math.exp %63 : vector<64x64xf32>
    %cst_28 = arith.constant dense<0.000000e+00> : vector<64xf32>
    %65 = vector.multi_reduction <add>, %64, %cst_28 [1] : vector<64x64xf32> to vector<64xf32>
    %66 = vector.shape_cast %65 : vector<64xf32> to vector<64x1xf32>
    %cst_29 = arith.constant 1.000000e+00 : f32
    %67 = vector.broadcast %cst_29 : f32 to vector<64x1xf32>
    %68 = arith.divf %67, %66 : vector<64x1xf32>
    %69 = vector.broadcast %68 : vector<64x1xf32> to vector<64x64xf32>
    %70 = arith.mulf %64, %69 : vector<64x64xf32>
    %cst_30 = arith.constant dense<0.000000e+00> : vector<64x32xf32>
    %71 = tpu.matmul %70, %57, %cst_30 {dimension_numbers = #tpu.dot_dimension_numbers<[1], [0], [0], [1], [0, 0, 1, 1], [], []>} : vector<64x64xf32>, vector<64x32xf32>, vector<64x32xf32> -> vector<64x32xf32>
    %72 = arith.mulf %71, %12 : vector<64x32xf32>
    %73 = vector.shape_cast %72 : vector<64x32xf32> to vector<4x16x32xf32>
    %cst_31 = arith.constant dense<0.000000e+00> : vector<16x32xf32>
    %74 = vector.multi_reduction <add>, %73, %cst_31 [0] : vector<4x16x32xf32> to vector<16x32xf32>
    %c0_32 = arith.constant 0 : index
    %c0_33 = arith.constant 0 : index
    %c0_34 = arith.constant 0 : index
    %75 = vector.load %arg7[%c0_32, %c0_33, %c0_34] : memref<2x32x32xf32, #tpu.memory_space<vmem>>, vector<1x32x32xf32>
    %76 = vector.shape_cast %75 : vector<1x32x32xf32> to vector<32x32xf32>
    %cst_35 = arith.constant dense<0.000000e+00> : vector<16x32xf32>
    %77 = tpu.matmul %74, %76, %cst_35 {dimension_numbers = #tpu.dot_dimension_numbers<[1], [0], [0], [1], [0, 0, 1, 1], [], []>} : vector<16x32xf32>, vector<32x32xf32>, vector<16x32xf32> -> vector<16x32xf32>
    %78 = arith.addf %9, %77 : vector<16x32xf32>
    %c0_36 = arith.constant 0 : index
    %c0_37 = arith.constant 0 : index
    %c0_38 = arith.constant 0 : index
    %79 = vector.load %arg8[%c0_36, %c0_37, %c0_38] : memref<2x1x32xf32, #tpu.memory_space<vmem>>, vector<1x1x32xf32>
    %80 = vector.shape_cast %79 : vector<1x1x32xf32> to vector<1x32xf32>
    %81 = vector.broadcast %80 : vector<1x32xf32> to vector<16x32xf32>
    %82 = arith.addf %78, %81 : vector<16x32xf32>
    %c0_39 = arith.constant 0 : index
    %c0_40 = arith.constant 0 : index
    %c0_41 = arith.constant 0 : index
    %83 = vector.load %arg15[%c0_39, %c0_40, %c0_41] : memref<2x1x32xf32, #tpu.memory_space<vmem>>, vector<1x1x32xf32>
    %84 = vector.shape_cast %83 : vector<1x1x32xf32> to vector<1x32xf32>
    %c0_42 = arith.constant 0 : index
    %c0_43 = arith.constant 0 : index
    %c0_44 = arith.constant 0 : index
    %85 = vector.load %arg16[%c0_42, %c0_43, %c0_44] : memref<2x1x32xf32, #tpu.memory_space<vmem>>, vector<1x1x32xf32>
    %86 = vector.shape_cast %85 : vector<1x1x32xf32> to vector<1x32xf32>
    %cst_45 = arith.constant dense<0.000000e+00> : vector<16xf32>
    %87 = vector.multi_reduction <add>, %82, %cst_45 [1] : vector<16x32xf32> to vector<16xf32>
    %88 = vector.shape_cast %87 : vector<16xf32> to vector<16x1xf32>
    %cst_46 = arith.constant 3.200000e+01 : f32
    %89 = vector.broadcast %cst_46 : f32 to vector<16x1xf32>
    %90 = arith.divf %88, %89 : vector<16x1xf32>
    %91 = vector.broadcast %90 : vector<16x1xf32> to vector<16x32xf32>
    %92 = arith.subf %82, %91 : vector<16x32xf32>
    %93 = arith.mulf %92, %92 : vector<16x32xf32>
    %cst_47 = arith.constant dense<0.000000e+00> : vector<16xf32>
    %94 = vector.multi_reduction <add>, %93, %cst_47 [1] : vector<16x32xf32> to vector<16xf32>
    %95 = vector.shape_cast %94 : vector<16xf32> to vector<16x1xf32>
    %cst_48 = arith.constant 3.200000e+01 : f32
    %96 = vector.broadcast %cst_48 : f32 to vector<16x1xf32>
    %97 = arith.divf %95, %96 : vector<16x1xf32>
    %98 = vector.broadcast %90 : vector<16x1xf32> to vector<16x32xf32>
    %99 = arith.subf %82, %98 : vector<16x32xf32>
    %100 = vector.broadcast %84 : vector<1x32xf32> to vector<16x32xf32>
    %101 = arith.mulf %100, %99 : vector<16x32xf32>
    %cst_49 = arith.constant 9.99999974E-6 : f32
    %102 = vector.broadcast %cst_49 : f32 to vector<16x1xf32>
    %103 = arith.addf %97, %102 : vector<16x1xf32>
    %104 = math.sqrt %103 : vector<16x1xf32>
    %105 = vector.broadcast %104 : vector<16x1xf32> to vector<16x32xf32>
    %106 = arith.divf %101, %105 : vector<16x32xf32>
    %107 = vector.broadcast %86 : vector<1x32xf32> to vector<16x32xf32>
    %108 = arith.addf %106, %107 : vector<16x32xf32>
    %c0_50 = arith.constant 0 : index
    %c0_51 = arith.constant 0 : index
    %c0_52 = arith.constant 0 : index
    %109 = vector.load %arg9[%c0_50, %c0_51, %c0_52] : memref<2x32x128xf32, #tpu.memory_space<vmem>>, vector<1x32x128xf32>
    %110 = vector.shape_cast %109 : vector<1x32x128xf32> to vector<32x128xf32>
    %cst_53 = arith.constant dense<0.000000e+00> : vector<16x128xf32>
    %111 = tpu.matmul %108, %110, %cst_53 {dimension_numbers = #tpu.dot_dimension_numbers<[1], [0], [0], [1], [0, 0, 1, 1], [], []>} : vector<16x32xf32>, vector<32x128xf32>, vector<16x128xf32> -> vector<16x128xf32>
    %c0_54 = arith.constant 0 : index
    %c0_55 = arith.constant 0 : index
    %c0_56 = arith.constant 0 : index
    %112 = vector.load %arg10[%c0_54, %c0_55, %c0_56] : memref<2x1x128xf32, #tpu.memory_space<vmem>>, vector<1x1x128xf32>
    %113 = vector.shape_cast %112 : vector<1x1x128xf32> to vector<1x128xf32>
    %114 = vector.broadcast %113 : vector<1x128xf32> to vector<16x128xf32>
    %115 = arith.addf %111, %114 : vector<16x128xf32>
    %cst_57 = arith.constant 0.636619746 : f32
    %116 = math.sqrt %cst_57 : f32
    %cst_58 = arith.constant 5.000000e-01 : f32
    %117 = vector.broadcast %cst_58 : f32 to vector<16x128xf32>
    %118 = arith.mulf %117, %115 : vector<16x128xf32>
    %cst_59 = arith.constant 4.471500e-02 : f32
    %119 = vector.broadcast %cst_59 : f32 to vector<16x128xf32>
    %120 = arith.mulf %119, %115 : vector<16x128xf32>
    %121 = arith.mulf %120, %115 : vector<16x128xf32>
    %122 = arith.mulf %121, %115 : vector<16x128xf32>
    %123 = arith.addf %115, %122 : vector<16x128xf32>
    %124 = vector.broadcast %116 : f32 to vector<16x128xf32>
    %125 = arith.mulf %124, %123 : vector<16x128xf32>
    %126 = math.tanh %125 : vector<16x128xf32>
    %cst_60 = arith.constant 1.000000e+00 : f32
    %127 = vector.broadcast %cst_60 : f32 to vector<16x128xf32>
    %128 = arith.addf %127, %126 : vector<16x128xf32>
    %129 = arith.mulf %118, %128 : vector<16x128xf32>
    %c0_61 = arith.constant 0 : index
    %c0_62 = arith.constant 0 : index
    %c0_63 = arith.constant 0 : index
    %130 = vector.load %arg11[%c0_61, %c0_62, %c0_63] : memref<2x128x32xf32, #tpu.memory_space<vmem>>, vector<1x128x32xf32>
    %131 = vector.shape_cast %130 : vector<1x128x32xf32> to vector<128x32xf32>
    %cst_64 = arith.constant dense<0.000000e+00> : vector<16x32xf32>
    %132 = tpu.matmul %129, %131, %cst_64 {dimension_numbers = #tpu.dot_dimension_numbers<[1], [0], [0], [1], [0, 0, 1, 1], [], []>} : vector<16x128xf32>, vector<128x32xf32>, vector<16x32xf32> -> vector<16x32xf32>
    %c0_65 = arith.constant 0 : index
    %c0_66 = arith.constant 0 : index
    %c0_67 = arith.constant 0 : index
    %133 = vector.load %arg12[%c0_65, %c0_66, %c0_67] : memref<2x1x32xf32, #tpu.memory_space<vmem>>, vector<1x1x32xf32>
    %134 = vector.shape_cast %133 : vector<1x1x32xf32> to vector<1x32xf32>
    %135 = vector.broadcast %134 : vector<1x32xf32> to vector<16x32xf32>
    %136 = arith.addf %132, %135 : vector<16x32xf32>
    %137 = arith.addf %82, %136 : vector<16x32xf32>
    %c1 = arith.constant 1 : index
    %c0_68 = arith.constant 0 : index
    %c0_69 = arith.constant 0 : index
    %138 = vector.load %arg13[%c1, %c0_68, %c0_69] : memref<2x1x32xf32, #tpu.memory_space<vmem>>, vector<1x1x32xf32>
    %139 = vector.shape_cast %138 : vector<1x1x32xf32> to vector<1x32xf32>
    %c1_70 = arith.constant 1 : index
    %c0_71 = arith.constant 0 : index
    %c0_72 = arith.constant 0 : index
    %140 = vector.load %arg14[%c1_70, %c0_71, %c0_72] : memref<2x1x32xf32, #tpu.memory_space<vmem>>, vector<1x1x32xf32>
    %141 = vector.shape_cast %140 : vector<1x1x32xf32> to vector<1x32xf32>
    %cst_73 = arith.constant dense<0.000000e+00> : vector<16xf32>
    %142 = vector.multi_reduction <add>, %137, %cst_73 [1] : vector<16x32xf32> to vector<16xf32>
    %143 = vector.shape_cast %142 : vector<16xf32> to vector<16x1xf32>
    %cst_74 = arith.constant 3.200000e+01 : f32
    %144 = vector.broadcast %cst_74 : f32 to vector<16x1xf32>
    %145 = arith.divf %143, %144 : vector<16x1xf32>
    %146 = vector.broadcast %145 : vector<16x1xf32> to vector<16x32xf32>
    %147 = arith.subf %137, %146 : vector<16x32xf32>
    %148 = arith.mulf %147, %147 : vector<16x32xf32>
    %cst_75 = arith.constant dense<0.000000e+00> : vector<16xf32>
    %149 = vector.multi_reduction <add>, %148, %cst_75 [1] : vector<16x32xf32> to vector<16xf32>
    %150 = vector.shape_cast %149 : vector<16xf32> to vector<16x1xf32>
    %cst_76 = arith.constant 3.200000e+01 : f32
    %151 = vector.broadcast %cst_76 : f32 to vector<16x1xf32>
    %152 = arith.divf %150, %151 : vector<16x1xf32>
    %153 = vector.broadcast %145 : vector<16x1xf32> to vector<16x32xf32>
    %154 = arith.subf %137, %153 : vector<16x32xf32>
    %155 = vector.broadcast %139 : vector<1x32xf32> to vector<16x32xf32>
    %156 = arith.mulf %155, %154 : vector<16x32xf32>
    %cst_77 = arith.constant 9.99999974E-6 : f32
    %157 = vector.broadcast %cst_77 : f32 to vector<16x1xf32>
    %158 = arith.addf %152, %157 : vector<16x1xf32>
    %159 = math.sqrt %158 : vector<16x1xf32>
    %160 = vector.broadcast %159 : vector<16x1xf32> to vector<16x32xf32>
    %161 = arith.divf %156, %160 : vector<16x32xf32>
    %162 = vector.broadcast %141 : vector<1x32xf32> to vector<16x32xf32>
    %163 = arith.addf %161, %162 : vector<16x32xf32>
    %c1_78 = arith.constant 1 : index
    %c0_79 = arith.constant 0 : index
    %c0_80 = arith.constant 0 : index
    %164 = vector.load %arg6[%c1_78, %c0_79, %c0_80] : memref<2x32x96xf32, #tpu.memory_space<vmem>>, vector<1x32x96xf32>
    %165 = vector.shape_cast %164 : vector<1x32x96xf32> to vector<32x96xf32>
    %cst_81 = arith.constant dense<0.000000e+00> : vector<16x96xf32>
    %166 = tpu.matmul %163, %165, %cst_81 {dimension_numbers = #tpu.dot_dimension_numbers<[1], [0], [0], [1], [0, 0, 1, 1], [], []>} : vector<16x32xf32>, vector<32x96xf32>, vector<16x96xf32> -> vector<16x96xf32>
    %167 = vector.extract_strided_slice %166 {offsets = [0, 0], sizes = [16, 32], strides = [1, 1]} : vector<16x96xf32> to vector<16x32xf32>
    %168 = vector.shape_cast %167 : vector<16x32xf32> to vector<1x16x32xf32>
    %169 = vector.shape_cast %168 : vector<1x16x32xf32> to vector<1x16x32xf32>
    %170 = vector.broadcast %169 : vector<1x16x32xf32> to vector<4x16x32xf32>
    %171 = vector.shape_cast %170 : vector<4x16x32xf32> to vector<64x32xf32>
    %172 = arith.mulf %171, %11 : vector<64x32xf32>
    %173 = vector.extract_strided_slice %166 {offsets = [0, 32], sizes = [16, 32], strides = [1, 1]} : vector<16x96xf32> to vector<16x32xf32>
    %174 = vector.shape_cast %173 : vector<16x32xf32> to vector<1x16x32xf32>
    %175 = vector.shape_cast %174 : vector<1x16x32xf32> to vector<1x16x32xf32>
    %176 = vector.broadcast %175 : vector<1x16x32xf32> to vector<4x16x32xf32>
    %177 = vector.shape_cast %176 : vector<4x16x32xf32> to vector<64x32xf32>
    %178 = vector.extract_strided_slice %166 {offsets = [0, 64], sizes = [16, 32], strides = [1, 1]} : vector<16x96xf32> to vector<16x32xf32>
    %179 = vector.shape_cast %178 : vector<16x32xf32> to vector<1x16x32xf32>
    %180 = vector.shape_cast %179 : vector<1x16x32xf32> to vector<1x16x32xf32>
    %181 = vector.broadcast %180 : vector<1x16x32xf32> to vector<4x16x32xf32>
    %182 = vector.shape_cast %181 : vector<4x16x32xf32> to vector<64x32xf32>
    %cst_82 = arith.constant dense<0.000000e+00> : vector<64x64xf32>
    %183 = tpu.matmul %172, %177, %cst_82 {dimension_numbers = #tpu.dot_dimension_numbers<[1], [1], [0], [0], [0, 0, 1, 0], [], []>} : vector<64x32xf32>, vector<64x32xf32>, vector<64x64xf32> -> vector<64x64xf32>
    %184 = arith.addf %183, %10 : vector<64x64xf32>
    %cst_83 = arith.constant dense<0xFF800000> : vector<64xf32>
    %185 = vector.multi_reduction <maximumf>, %184, %cst_83 [1] : vector<64x64xf32> to vector<64xf32>
    %186 = vector.shape_cast %185 : vector<64xf32> to vector<64x1xf32>
    %187 = vector.broadcast %186 : vector<64x1xf32> to vector<64x64xf32>
    %188 = arith.subf %184, %187 : vector<64x64xf32>
    %189 = math.exp %188 : vector<64x64xf32>
    %cst_84 = arith.constant dense<0.000000e+00> : vector<64xf32>
    %190 = vector.multi_reduction <add>, %189, %cst_84 [1] : vector<64x64xf32> to vector<64xf32>
    %191 = vector.shape_cast %190 : vector<64xf32> to vector<64x1xf32>
    %cst_85 = arith.constant 1.000000e+00 : f32
    %192 = vector.broadcast %cst_85 : f32 to vector<64x1xf32>
    %193 = arith.divf %192, %191 : vector<64x1xf32>
    %194 = vector.broadcast %193 : vector<64x1xf32> to vector<64x64xf32>
    %195 = arith.mulf %189, %194 : vector<64x64xf32>
    %cst_86 = arith.constant dense<0.000000e+00> : vector<64x32xf32>
    %196 = tpu.matmul %195, %182, %cst_86 {dimension_numbers = #tpu.dot_dimension_numbers<[1], [0], [0], [1], [0, 0, 1, 1], [], []>} : vector<64x64xf32>, vector<64x32xf32>, vector<64x32xf32> -> vector<64x32xf32>
    %197 = arith.mulf %196, %12 : vector<64x32xf32>
    %198 = vector.shape_cast %197 : vector<64x32xf32> to vector<4x16x32xf32>
    %cst_87 = arith.constant dense<0.000000e+00> : vector<16x32xf32>
    %199 = vector.multi_reduction <add>, %198, %cst_87 [0] : vector<4x16x32xf32> to vector<16x32xf32>
    %c1_88 = arith.constant 1 : index
    %c0_89 = arith.constant 0 : index
    %c0_90 = arith.constant 0 : index
    %200 = vector.load %arg7[%c1_88, %c0_89, %c0_90] : memref<2x32x32xf32, #tpu.memory_space<vmem>>, vector<1x32x32xf32>
    %201 = vector.shape_cast %200 : vector<1x32x32xf32> to vector<32x32xf32>
    %cst_91 = arith.constant dense<0.000000e+00> : vector<16x32xf32>
    %202 = tpu.matmul %199, %201, %cst_91 {dimension_numbers = #tpu.dot_dimension_numbers<[1], [0], [0], [1], [0, 0, 1, 1], [], []>} : vector<16x32xf32>, vector<32x32xf32>, vector<16x32xf32> -> vector<16x32xf32>
    %203 = arith.addf %137, %202 : vector<16x32xf32>
    %c1_92 = arith.constant 1 : index
    %c0_93 = arith.constant 0 : index
    %c0_94 = arith.constant 0 : index
    %204 = vector.load %arg8[%c1_92, %c0_93, %c0_94] : memref<2x1x32xf32, #tpu.memory_space<vmem>>, vector<1x1x32xf32>
    %205 = vector.shape_cast %204 : vector<1x1x32xf32> to vector<1x32xf32>
    %206 = vector.broadcast %205 : vector<1x32xf32> to vector<16x32xf32>
    %207 = arith.addf %203, %206 : vector<16x32xf32>
    %c1_95 = arith.constant 1 : index
    %c0_96 = arith.constant 0 : index
    %c0_97 = arith.constant 0 : index
    %208 = vector.load %arg15[%c1_95, %c0_96, %c0_97] : memref<2x1x32xf32, #tpu.memory_space<vmem>>, vector<1x1x32xf32>
    %209 = vector.shape_cast %208 : vector<1x1x32xf32> to vector<1x32xf32>
    %c1_98 = arith.constant 1 : index
    %c0_99 = arith.constant 0 : index
    %c0_100 = arith.constant 0 : index
    %210 = vector.load %arg16[%c1_98, %c0_99, %c0_100] : memref<2x1x32xf32, #tpu.memory_space<vmem>>, vector<1x1x32xf32>
    %211 = vector.shape_cast %210 : vector<1x1x32xf32> to vector<1x32xf32>
    %cst_101 = arith.constant dense<0.000000e+00> : vector<16xf32>
    %212 = vector.multi_reduction <add>, %207, %cst_101 [1] : vector<16x32xf32> to vector<16xf32>
    %213 = vector.shape_cast %212 : vector<16xf32> to vector<16x1xf32>
    %cst_102 = arith.constant 3.200000e+01 : f32
    %214 = vector.broadcast %cst_102 : f32 to vector<16x1xf32>
    %215 = arith.divf %213, %214 : vector<16x1xf32>
    %216 = vector.broadcast %215 : vector<16x1xf32> to vector<16x32xf32>
    %217 = arith.subf %207, %216 : vector<16x32xf32>
    %218 = arith.mulf %217, %217 : vector<16x32xf32>
    %cst_103 = arith.constant dense<0.000000e+00> : vector<16xf32>
    %219 = vector.multi_reduction <add>, %218, %cst_103 [1] : vector<16x32xf32> to vector<16xf32>
    %220 = vector.shape_cast %219 : vector<16xf32> to vector<16x1xf32>
    %cst_104 = arith.constant 3.200000e+01 : f32
    %221 = vector.broadcast %cst_104 : f32 to vector<16x1xf32>
    %222 = arith.divf %220, %221 : vector<16x1xf32>
    %223 = vector.broadcast %215 : vector<16x1xf32> to vector<16x32xf32>
    %224 = arith.subf %207, %223 : vector<16x32xf32>
    %225 = vector.broadcast %209 : vector<1x32xf32> to vector<16x32xf32>
    %226 = arith.mulf %225, %224 : vector<16x32xf32>
    %cst_105 = arith.constant 9.99999974E-6 : f32
    %227 = vector.broadcast %cst_105 : f32 to vector<16x1xf32>
    %228 = arith.addf %222, %227 : vector<16x1xf32>
    %229 = math.sqrt %228 : vector<16x1xf32>
    %230 = vector.broadcast %229 : vector<16x1xf32> to vector<16x32xf32>
    %231 = arith.divf %226, %230 : vector<16x32xf32>
    %232 = vector.broadcast %211 : vector<1x32xf32> to vector<16x32xf32>
    %233 = arith.addf %231, %232 : vector<16x32xf32>
    %c1_106 = arith.constant 1 : index
    %c0_107 = arith.constant 0 : index
    %c0_108 = arith.constant 0 : index
    %234 = vector.load %arg9[%c1_106, %c0_107, %c0_108] : memref<2x32x128xf32, #tpu.memory_space<vmem>>, vector<1x32x128xf32>
    %235 = vector.shape_cast %234 : vector<1x32x128xf32> to vector<32x128xf32>
    %cst_109 = arith.constant dense<0.000000e+00> : vector<16x128xf32>
    %236 = tpu.matmul %233, %235, %cst_109 {dimension_numbers = #tpu.dot_dimension_numbers<[1], [0], [0], [1], [0, 0, 1, 1], [], []>} : vector<16x32xf32>, vector<32x128xf32>, vector<16x128xf32> -> vector<16x128xf32>
    %c1_110 = arith.constant 1 : index
    %c0_111 = arith.constant 0 : index
    %c0_112 = arith.constant 0 : index
    %237 = vector.load %arg10[%c1_110, %c0_111, %c0_112] : memref<2x1x128xf32, #tpu.memory_space<vmem>>, vector<1x1x128xf32>
    %238 = vector.shape_cast %237 : vector<1x1x128xf32> to vector<1x128xf32>
    %239 = vector.broadcast %238 : vector<1x128xf32> to vector<16x128xf32>
    %240 = arith.addf %236, %239 : vector<16x128xf32>
    %cst_113 = arith.constant 0.636619746 : f32
    %241 = math.sqrt %cst_113 : f32
    %cst_114 = arith.constant 5.000000e-01 : f32
    %242 = vector.broadcast %cst_114 : f32 to vector<16x128xf32>
    %243 = arith.mulf %242, %240 : vector<16x128xf32>
    %cst_115 = arith.constant 4.471500e-02 : f32
    %244 = vector.broadcast %cst_115 : f32 to vector<16x128xf32>
    %245 = arith.mulf %244, %240 : vector<16x128xf32>
    %246 = arith.mulf %245, %240 : vector<16x128xf32>
    %247 = arith.mulf %246, %240 : vector<16x128xf32>
    %248 = arith.addf %240, %247 : vector<16x128xf32>
    %249 = vector.broadcast %241 : f32 to vector<16x128xf32>
    %250 = arith.mulf %249, %248 : vector<16x128xf32>
    %251 = math.tanh %250 : vector<16x128xf32>
    %cst_116 = arith.constant 1.000000e+00 : f32
    %252 = vector.broadcast %cst_116 : f32 to vector<16x128xf32>
    %253 = arith.addf %252, %251 : vector<16x128xf32>
    %254 = arith.mulf %243, %253 : vector<16x128xf32>
    %c1_117 = arith.constant 1 : index
    %c0_118 = arith.constant 0 : index
    %c0_119 = arith.constant 0 : index
    %255 = vector.load %arg11[%c1_117, %c0_118, %c0_119] : memref<2x128x32xf32, #tpu.memory_space<vmem>>, vector<1x128x32xf32>
    %256 = vector.shape_cast %255 : vector<1x128x32xf32> to vector<128x32xf32>
    %cst_120 = arith.constant dense<0.000000e+00> : vector<16x32xf32>
    %257 = tpu.matmul %254, %256, %cst_120 {dimension_numbers = #tpu.dot_dimension_numbers<[1], [0], [0], [1], [0, 0, 1, 1], [], []>} : vector<16x128xf32>, vector<128x32xf32>, vector<16x32xf32> -> vector<16x32xf32>
    %c1_121 = arith.constant 1 : index
    %c0_122 = arith.constant 0 : index
    %c0_123 = arith.constant 0 : index
    %258 = vector.load %arg12[%c1_121, %c0_122, %c0_123] : memref<2x1x32xf32, #tpu.memory_space<vmem>>, vector<1x1x32xf32>
    %259 = vector.shape_cast %258 : vector<1x1x32xf32> to vector<1x32xf32>
    %260 = vector.broadcast %259 : vector<1x32xf32> to vector<16x32xf32>
    %261 = arith.addf %257, %260 : vector<16x32xf32>
    %262 = arith.addf %207, %261 : vector<16x32xf32>
    %c0_124 = arith.constant 0 : index
    %c0_125 = arith.constant 0 : index
    %263 = vector.load %arg17[%c0_124, %c0_125] : memref<1x32xf32, #tpu.memory_space<vmem>>, vector<1x32xf32>
    %c0_126 = arith.constant 0 : index
    %c0_127 = arith.constant 0 : index
    %264 = vector.load %arg18[%c0_126, %c0_127] : memref<1x32xf32, #tpu.memory_space<vmem>>, vector<1x32xf32>
    %cst_128 = arith.constant dense<0.000000e+00> : vector<16xf32>
    %265 = vector.multi_reduction <add>, %262, %cst_128 [1] : vector<16x32xf32> to vector<16xf32>
    %266 = vector.shape_cast %265 : vector<16xf32> to vector<16x1xf32>
    %cst_129 = arith.constant 3.200000e+01 : f32
    %267 = vector.broadcast %cst_129 : f32 to vector<16x1xf32>
    %268 = arith.divf %266, %267 : vector<16x1xf32>
    %269 = vector.broadcast %268 : vector<16x1xf32> to vector<16x32xf32>
    %270 = arith.subf %262, %269 : vector<16x32xf32>
    %271 = arith.mulf %270, %270 : vector<16x32xf32>
    %cst_130 = arith.constant dense<0.000000e+00> : vector<16xf32>
    %272 = vector.multi_reduction <add>, %271, %cst_130 [1] : vector<16x32xf32> to vector<16xf32>
    %273 = vector.shape_cast %272 : vector<16xf32> to vector<16x1xf32>
    %cst_131 = arith.constant 3.200000e+01 : f32
    %274 = vector.broadcast %cst_131 : f32 to vector<16x1xf32>
    %275 = arith.divf %273, %274 : vector<16x1xf32>
    %276 = vector.broadcast %268 : vector<16x1xf32> to vector<16x32xf32>
    %277 = arith.subf %262, %276 : vector<16x32xf32>
    %278 = vector.broadcast %263 : vector<1x32xf32> to vector<16x32xf32>
    %279 = arith.mulf %278, %277 : vector<16x32xf32>
    %cst_132 = arith.constant 9.99999974E-6 : f32
    %280 = vector.broadcast %cst_132 : f32 to vector<16x1xf32>
    %281 = arith.addf %275, %280 : vector<16x1xf32>
    %282 = math.sqrt %281 : vector<16x1xf32>
    %283 = vector.broadcast %282 : vector<16x1xf32> to vector<16x32xf32>
    %284 = arith.divf %279, %283 : vector<16x32xf32>
    %285 = vector.broadcast %264 : vector<1x32xf32> to vector<16x32xf32>
    %286 = arith.addf %284, %285 : vector<16x32xf32>
    %c0_133 = arith.constant 0 : index
    %c0_134 = arith.constant 0 : index
    %287 = vector.load %arg19[%c0_133, %c0_134] : memref<32x256xf32, #tpu.memory_space<vmem>>, vector<32x256xf32>
    %cst_135 = arith.constant dense<0.000000e+00> : vector<16x256xf32>
    %288 = tpu.matmul %286, %287, %cst_135 {dimension_numbers = #tpu.dot_dimension_numbers<[1], [0], [0], [1], [0, 0, 1, 1], [], []>} : vector<16x32xf32>, vector<32x256xf32>, vector<16x256xf32> -> vector<16x256xf32>
    %c0_136 = arith.constant 0 : index
    %c0_137 = arith.constant 0 : index
    %289 = vector.load %arg20[%c0_136, %c0_137] : memref<16x256xf32, #tpu.memory_space<vmem>>, vector<16x256xf32>
    tpu.vector_store %arg20[%c0_136, %c0_137], %288 {strides = array<i32>} : memref<16x256xf32, #tpu.memory_space<vmem>>, vector<16x256xf32>,
    return
  }
}

</mosaic_0001>

<bundles_post_ra>
// kernel: tpu_custom_call.1
= control target key start
LH: loop header
LB: loop body
LE: loop exit
PB: predicated region body
PF: predicated region fallthrough
CT: control target
= control target key end

     0   :  { %s4024_s0 = inlined_call_operand.vmem [shape: s32[16,1], index: 0, kind: input, shape index: {}]   ;;  %s4025_s1 = inlined_call_operand.vmem [shape: f32[256,32], index: 1, kind: input, shape index: {}]   ;;  %s4026_s2 = inlined_call_operand.vmem [shape: f32[16,32], index: 2, kind: input, shape index: {}]   ;;  %s4027_s3 = inlined_call_operand.vmem [shape: f32[64,64], index: 3, kind: input, shape index: {}]   ;;  %s4028_s4 = inlined_call_operand.vmem [shape: f32[64,32], index: 4, kind: input, shape index: {}]   ;;  %s4029_s5 = inlined_call_operand.vmem [shape: f32[64,32], index: 5, kind: input, shape index: {}]   ;;  %s4030_s6 = inlined_call_operand.vmem [shape: f32[2,32,96], index: 6, kind: input, shape index: {}]   ;;  %s4031_s7 = inlined_call_operand.vmem [shape: f32[2,32,32], index: 7, kind: input, shape index: {}]   ;;  %s4032_s8 = inlined_call_operand.vmem [shape: f32[2,1,32], index: 8, kind: input, shape index: {}]   ;;  %s4033_s9 = inlined_call_operand.vmem [shape: f32[2,32,128], index: 9, kind: input, shape index: {}]   ;;  %s4034_s10 = inlined_call_operand.vmem [shape: f32[2,1,128], index: 10, kind: input, shape index: {}]   ;;  %s4035_s11 = inlined_call_operand.vmem [shape: f32[2,128,32], index: 11, kind: input, shape index: {}]   ;;  %s4036_s12 = inlined_call_operand.vmem [shape: f32[2,1,32], index: 12, kind: input, shape index: {}]   ;;  %s4037_s13 = inlined_call_operand.vmem [shape: f32[2,1,32], index: 13, kind: input, shape index: {}]   ;;  %s4038_s14 = inlined_call_operand.vmem [shape: f32[2,1,32], index: 14, kind: input, shape index: {}]   ;;  %s4039_s15 = inlined_call_operand.vmem [shape: f32[2,1,32], index: 15, kind: input, shape index: {}]   ;;  %s4040_s16 = inlined_call_operand.vmem [shape: f32[2,1,32], index: 16, kind: input, shape index: {}]   ;;  %s4041_s17 = inlined_call_operand.vmem [shape: f32[1,32], index: 17, kind: input, shape index: {}]   ;;  %s4042_s18 = inlined_call_operand.vmem [shape: f32[1,32], index: 18, kind: input, shape index: {}]   ;;  %s4043_s19 = inlined_call_operand.vmem [shape: f32[32,256], index: 19, kind: input, shape index: {}]   ;;  %s4044_s20 = inlined_call_operand.hbm [shape: f32[16,256], index: 20, kind: output, shape index: {}]  }
   0x1   :  { %4051 = sst [smem:[#allocation5_spill]] %s4024_s0 }
   0x2   :  { %4052 = sst [smem:[#allocation6_spill]] %s4025_s1 }
   0x3   :  { %4053 = sst [smem:[#allocation7_spill]] %s4026_s2 }
   0x4   :  { %4054 = sst [smem:[#allocation8_spill]] %s4027_s3 }
   0x5   :  { %4055 = sst [smem:[#allocation9_spill]] %s4028_s4 }
   0x6   :  { %4056 = sst [smem:[#allocation10_spill]] %s4036_s12 }
   0x7   :  { %s4057_s23 = sld [smem:[#allocation5_spill]]  ;;  %s4058_s12 = sld [smem:[#allocation6_spill]]  ;;  %v3159_v2 = vmov 0  }
   0x8   :  { %3002 = vset.pattern.permute.xlu0 %v3159_v2 }
   0xd   :  { %v69_v0 = vld [vmem:[%s4057_s23] sm:$0xff]  ;;  %v70_v3 = vld [vmem:[%s4057_s23 + $0x8] sm:$0xff]  ;;  %v107_v9 = vld [vmem:[%s4058_s12 + $0x90] sm:$0xff] }
   0xe   :  { %v105_v1 = vld [vmem:[%s4058_s12 + $0x80] sm:$0xff]  ;;  %v106_v4 = vld [vmem:[%s4058_s12 + $0x88] sm:$0xff]  ;;  %72 = vperm.xlu0 %3002, %v69_v0   ;;  %v108_v10 = vld [vmem:[%s4058_s12 + $0x98] sm:$0xff] }
   0xf   :  { %v89_v5 = vld [vmem:[%s4058_s12] sm:$0xff]  ;;  %v90_v6 = vld [vmem:[%s4058_s12 + $0x8] sm:$0xff]  ;;  %v2762_v7 = vpack.c.bf16 %v106_v4, %v105_v1  ;;  %v91_v11 = vld [vmem:[%s4058_s12 + $0x10] sm:$0xff]  ;;  %v2766_v12 = vpack.c.bf16 %v108_v10, %v107_v9 }
  0x10   :  { %v2764_v8 = vpack.c.bf16 %v90_v6, %v89_v5  ;;  %v92_v13 = vld [vmem:[%s4058_s12 + $0x18] sm:$0xff]  ;;  %v109_v14 = vld [vmem:[%s4058_s12 + $0xa0] sm:$0xff]  ;;  %v110_v15 = vld [vmem:[%s4058_s12 + $0xa8] sm:$0xff] }
  0x11   :  { %2763 = vmatprep.subr.bf16.mxu0 %v2762_v7  ;;  %v2768_v16 = vpack.c.bf16 %v92_v13, %v91_v11  ;;  %v2770_v17 = vpack.c.bf16 %v110_v15, %v109_v14  ;;  %v93_v18 = vld [vmem:[%s4058_s12 + $0x20] sm:$0xff]  ;;  %v94_v19 = vld [vmem:[%s4058_s12 + $0x28] sm:$0xff]  ;;  %v111_v20 = vld [vmem:[%s4058_s12 + $0xb0] sm:$0xff] }
  0x12   :  { %2765 = vmatpush3.bf16.msra.mxu0 %v2764_v8  ;;  %75 = vperm.xlu0 %3002, %v70_v3   ;;  %v112_v21 = vld [vmem:[%s4058_s12 + $0xb8] sm:$0xff]  ;;  %v2772_v22 = vpack.c.bf16 %v94_v19, %v93_v18  ;;  %v95_v24 = vld [vmem:[%s4058_s12 + $0x30] sm:$0xff]  ;;  %v113_v26 = vld [vmem:[%s4058_s12 + $0xc0] sm:$0xff] }
  0x13   :  { %2767 = vmatprep.subr.bf16.mxu0 %v2766_v12  ;;  %v2774_v23 = vpack.c.bf16 %v112_v21, %v111_v20  ;;  %v96_v25 = vld [vmem:[%s4058_s12 + $0x38] sm:$0xff]  ;;  %v114_v27 = vld [vmem:[%s4058_s12 + $0xc8] sm:$0xff] }
  0x16   :  { %2769 = vmatpush3.bf16.msra.mxu0 %v2768_v16 }
  0x17   :  { %2771 = vmatprep.subr.bf16.mxu0 %v2770_v17 }
  0x18   :  { %25 = vsyncpa [#allocation3], 0  ;;  %v2776_v28 = vpack.c.bf16 %v96_v25, %v95_v24  ;;  %v2778_v29 = vpack.c.bf16 %v114_v27, %v113_v26  ;;  %v97_v30 = vld [vmem:[%s4058_s12 + $0x40] sm:$0xff]  ;;  %v98_v31 = vld [vmem:[%s4058_s12 + $0x48] sm:$0xff]  ;;  %v66_v51 = vlaneseq  ;;  %v3160_v55 = vmov 1.0   ;;  %s4059_s4 = sld [smem:[#allocation7_spill]] }
  0x19   :  { %v115_v32 = vld [vmem:[%s4058_s12 + $0xd0] sm:$0xff]  ;;  %v116_v33 = vld [vmem:[%s4058_s12 + $0xd8] sm:$0xff]  ;;  %v2780_v34 = vpack.c.bf16 %v98_v31, %v97_v30  ;;  %v117_v38 = vld [vmem:[%s4058_s12 + $0xe0] sm:$0xff]  ;;  %vm224_vm4 = vcmask 261120   ;;  %s4060_s29 = sld [smem:[#allocation9_spill]]  ;;  %s3161_s30 = smov 96  }
  0x1a   :  { %2773 = vmatpush3.bf16.msra.mxu0 %v2772_v22  ;;  %v2782_v35 = vpack.c.bf16 %v116_v33, %v115_v32  ;;  %v99_v36 = vld [vmem:[%s4058_s12 + $0x50] sm:$0xff]  ;;  %v100_v37 = vld [vmem:[%s4058_s12 + $0x58] sm:$0xff]  ;;  %v118_v39 = vld [vmem:[%s4058_s12 + $0xe8] sm:$0xff]  ;;  %v67_v52 = vand.u32 127, %v66_v51  ;;  %s4063_s1 = sld [smem:[#allocation8_spill]]  ;;  %vm514_vm10 = vcmask 523264  }
  0x1b   :  { %2775 = vmatprep.subr.bf16.mxu0 %v2774_v23  ;;  %v2784_v40 = vpack.c.bf16 %v100_v37, %v99_v36  ;;  %v2786_v41 = vpack.c.bf16 %v118_v39, %v117_v38  ;;  %v101_v42 = vld [vmem:[%s4058_s12 + $0x60] sm:$0xff]  ;;  %v102_v43 = vld [vmem:[%s4058_s12 + $0x68] sm:$0xff]  ;;  %v119_v44 = vld [vmem:[%s4058_s12 + $0xf0] sm:$0xff]  ;;  %s4064_s22 = sld [smem:[#allocation10_spill]] }
  0x1c   :  { %v120_v45 = vld [vmem:[%s4058_s12 + $0xf8] sm:$0xff]  ;;  %v2788_v46 = vpack.c.bf16 %v102_v43, %v101_v42  ;;  %v103_v48 = vld [vmem:[%s4058_s12 + $0x70] sm:$0xff]  ;;  %v68_v53 = vadd.s32 128, %v67_v52  ;;  %v282_v15 = vld [vmem:[%s4030_s6] sm:$0xff] }
  0x1d   :  { %v2790_v47 = vpack.c.bf16 %v120_v45, %v119_v44  ;;  %v104_v49 = vld [vmem:[%s4058_s12 + $0x78] sm:$0xff]  ;;  %v283_v16 = vld [vmem:[%s4030_s6 + $0x8] sm:$0xff]  ;;  %v284_v17 = vld [vmem:[%s4030_s6 + $0x10] sm:$0xff] }
  0x1e   :  { %2777 = vmatpush3.bf16.msra.mxu0 %v2776_v28  ;;  %v2792_v50 = vpack.c.bf16 %v104_v49, %v103_v48  ;;  %v121_v58 = vld [vmem:[%s4059_s4] sm:$0xff]  ;;  %v122_v63 = vld [vmem:[%s4059_s4 + $0x8] sm:$0xff]  ;;  %v2794_v18 = vpack.c.bf16 %v283_v16, %v282_v15  ;;  %v285_v19 = vld [vmem:[%s4030_s6 + $0x18] sm:$0xff] }
  0x1f   :  { %2779 = vmatprep.subr.bf16.mxu0 %v2778_v29  ;;  %v2798_v20 = vpack.c.bf16 %v285_v19, %v284_v17  ;;  %v2227_v37 = vld [vmem:[%s4037_s13] ss:$0 sm:$0xff]  ;;  %vm3425_vm9 = vmpackc.low %vm224_vm4, %vm224_vm4 }
  0x20   :  { %2795 = vmatprep.subr.bf16.mxu1 %v2794_v18  ;;  %v3509_v15 = vld [vmem:[%s4063_s1 + $0x18] sm:$0xff] }
  0x21   :  { %2797 = vmatpush3.bf16.msra.mxu1 %v2794_v18  ;;  %v3515_v18 = vld [vmem:[%s4063_s1 + $0x10] sm:$0xff] }
  0x22   :  { %2781 = vmatpush3.bf16.msra.mxu0 %v2780_v34  ;;  %2799 = vmatprep.subr.bf16.mxu1 %v2798_v20 }
  0x23   :  { %2783 = vmatprep.subr.bf16.mxu0 %v2782_v35 }
  0x25   :  { %2801 = vmatpush3.bf16.msra.mxu1 %v2798_v20 }
  0x26   :  { %2785 = vmatpush3.bf16.msra.mxu0 %v2784_v40  ;;  %v2228_v40 = vld [vmem:[%s4038_s14] ss:$0 sm:$0xff] }
  0x27   :  { %2787 = vmatprep.subr.bf16.mxu0 %v2786_v41 }
  0x2a   :  { %2789 = vmatpush3.bf16.msra.mxu0 %v2788_v46 }
  0x2b   :  { %2791 = vmatprep.subr.bf16.mxu0 %v2790_v47  ;;  %v3415_v47 = vld [vmem:[%s4060_s29] sm:$0xff] }
  0x2e   :  { %2793 = vmatpush3.bf16.msra.mxu0 %v2792_v50 }
  0x8d   :  { %v73_v54 = vpop.permute.xlu0 %72 }
  0x8e   :  { %vm77_vm0 = vcmp.eq.s32.totalorder %v67_v52, %v73_v54  ;;  %vm78_vm1 = vcmp.eq.s32.totalorder %v68_v53, %v73_v54 }
  0x8f   :  { %2223 = vmatprep.mubr.msk.f32.mxu0 %vm78_vm1, %v3160_v55 }
  0x90   :  { %2224 = vmatmul.mubr.msk.f32.vlgmr.msra.gmra.mrb[0].mxu0 %vm77_vm0, %v3160_v55 }
  0x91   :  { %v76_v56 = vpop.permute.xlu0 %75 }
  0x92   :  { %vm79_vm2 = vcmp.eq.s32.totalorder %v67_v52, %v76_v56  ;;  %vm80_vm3 = vcmp.eq.s32.totalorder %v68_v53, %v76_v56 }
  0x93   :  { %2225 = vmatprep.mubr.msk.f32.mxu0 %vm80_vm3, %v3160_v55 }
  0x94   :  { %2226 = vmatmul.mubr.msk.f32.gmra.mrb[2].mxu0 %vm79_vm2, %v3160_v55 }
 0x163   :  { %v2372_v57 = vpop.f32.mrb[0].mxu0 }
 0x164   :  { %v2373_v59 = vpop.f32.mrb[1].mxu0 }
 0x165   :  { %v2374_v60 = vadd.f32 %v2373_v59, %v2372_v57  ;;  %v3448_v57 = vld [vmem:[%s4060_s29 + $0x8] sm:$0xff] }
 0x167   :  { %v3377_v61 = vadd.f32 %v2374_v60, %v121_v58  ;;  %v2375_v62 = vpop.f32.mrb[2].mxu0  ;;  %v3453_v58 = vld [vmem:[%s4060_s29 + $0x10] sm:$0xff] }
 0x168   :  { %v2376_v0 = vpop.f32.mrb[3].mxu0 }
 0x169   :  { %v2377_v1 = vadd.f32 %v2376_v0, %v2375_v62  ;;  %v225_v2 = vsel %vm224_vm4, %v3377_v61, 0.0  ;;  %v3460_v62 = vld [vmem:[%s4060_s29 + $0x18] sm:$0xff] }
 0x16a   :  { %226 = vadd.xlane.f32.xlu1 %v225_v2  ;;  %v3474_v2 = vld [vmem:[%s4060_s29 + $0x28] sm:$0xff] }
 0x16b   :  { %v3384_v3 = vadd.f32 %v2377_v1, %v122_v63  ;;  %v3466_v63 = vld [vmem:[%s4060_s29 + $0x20] sm:$0xff] }
 0x16d   :  { %v228_v4 = vsel %vm224_vm4, %v3384_v3, 0.0 }
 0x16e   :  { %229 = vadd.xlane.f32.xlu1 %v228_v4  ;;  %v3480_v4 = vld [vmem:[%s4060_s29 + $0x30] sm:$0xff] }
 0x1f7   :  { %v227_v5 = vpop.xlane.xlu1 %226 }
 0x1f8   :  { %v232_v6 = vmul.f32 0.03125, %v227_v5 }
 0x1fa   :  { %v234_v7 = vsub.f32 %v3377_v61, %v232_v6 }
 0x1fb   :  { %v230_v8 = vpop.xlane.xlu1 %229 }
 0x1fc   :  { %v233_v9 = vmul.f32 0.03125, %v230_v8  ;;  %v236_v10 = vmul.f32 %v234_v7, %v234_v7  ;;  %v252_v38 = vmul.f32 %v2227_v37, %v234_v7  ;;  %v3488_v7 = vld [vmem:[%s4060_s29 + $0x38] sm:$0xff] }
 0x1fe   :  { %v235_v11 = vsub.f32 %v3384_v3, %v233_v9  ;;  %v238_v12 = vsel %vm224_vm4, %v236_v10, 0.0  ;;  %v3497_v9 = vld [vmem:[%s4063_s1 + $0x8] sm:$0xff]  ;;  %v3502_v10 = vld [vmem:[%s4063_s1] sm:$0xff] }
 0x1ff   :  { %239 = vadd.xlane.f32.xlu0 %v238_v12 }
 0x200   :  { %v237_v13 = vmul.f32 %v235_v11, %v235_v11  ;;  %v253_v42 = vmul.f32 %v2227_v37, %v235_v11  ;;  %v3545_v37 = vld [vmem:[%s4063_s1 + $0x38] sm:$0xff] }
 0x202   :  { %v241_v14 = vsel %vm224_vm4, %v237_v13, 0.0 }
 0x203   :  { %242 = vadd.xlane.f32.xlu1 %v241_v14 }
 0x28c   :  { %v240_v21 = vpop.xlane.xlu0 %239 }
 0x28d   :  { %v244_v22 = vmul.f32 0.03125, %v240_v21 }
 0x28f   :  { %v254_v23 = vadd.f32 1e-05, %v244_v22 }
 0x290   :  { %v243_v24 = vpop.xlane.xlu1 %242 }
 0x291   :  { %3023 = vrsqrt.f32 %v254_v23  ;;  %v245_v25 = vmul.f32 0.03125, %v243_v24  ;;  %vm258_vm5 = vcmp.eq.f32.partialorder %v254_v23, inf  ;;  %v261_v29 = vand.u32 2147483648, %v254_v23  ;;  %v3524_v24 = vld [vmem:[%s4063_s1 + $0x28] sm:$0xff] }
 0x292   :  { %vm260_vm6 = vcmp.eq.f32.partialorder %v254_v23, 0.0 }
 0x293   :  { %v255_v26 = vadd.f32 1e-05, %v245_v25 }
 0x295   :  { %3025 = vrsqrt.f32 %v255_v26  ;;  %vm265_vm7 = vcmp.eq.f32.partialorder %v255_v26, inf  ;;  %v268_v34 = vand.u32 2147483648, %v255_v26  ;;  %vm267_vm8 = vcmp.eq.f32.partialorder %v255_v26, 0.0 }
 0x29b   :  { %v3024_v27 = vpop.eup %3023 }
 0x29c   :  { %v257_v28 = vmul.f32 %v3024_v27, %v254_v23 }
 0x29e   :  { %v259_v30 = vsel %vm258_vm5, %v254_v23, %v257_v28 }
 0x29f   :  { %v3026_v31 = vpop.eup %3025  ;;  %v262_v32 = vsel %vm260_vm6, %v261_v29, %v259_v30  ;;  %v3531_v29 = vld [vmem:[%s4063_s1 + $0x20] sm:$0xff] }
 0x2a0   :  { %v264_v33 = vmul.f32 %v3026_v31, %v255_v26  ;;  %3027 = vrcp.f32 %v262_v32 }
 0x2a2   :  { %v266_v35 = vsel %vm265_vm7, %v255_v26, %v264_v33 }
 0x2a3   :  { %v269_v36 = vsel %vm267_vm8, %v268_v34, %v266_v35  ;;  %v3538_v34 = vld [vmem:[%s4063_s1 + $0x30] sm:$0xff]  ;;  %s3162_s1 = smov 64  }
 0x2a4   :  { %3029 = vrcp.f32 %v269_v36 }
 0x2aa   :  { %v3028_v39 = vpop.eup %3027 }
 0x2ab   :  { %v271_v41 = vmul.f32 %v3028_v39, %v252_v38 }
 0x2ad   :  { %v280_v43 = vadd.f32 %v2228_v40, %v271_v41 }
 0x2ae   :  { %v3030_v44 = vpop.eup %3029 }
 0x2af   :  { %v273_v45 = vmul.f32 %v3030_v44, %v253_v42  ;;  %2522 = vmatprep.mubr.msk.f32.mxu1 %vm224_vm4, %v280_v43 }
 0x2b1   :  { %v281_v46 = vadd.f32 %v2228_v40, %v273_v45 }
 0x2b3   :  { %2523 = vmatmul.mubr.msk.f32.vlgmr.msra.gmra.mrb[0].mxu1 %vm224_vm4, %v281_v46 }
 0x386   :  { %v2524_v48 = vpop.f32.mrb[0].mxu1 }
 0x387   :  { %v358_v49 = vpop.f32.mrb[1].mxu1  ;;  %v368_v59 = vmul.f32 %v2524_v48, %v3448_v57  ;;  %v370_v0 = vmul.f32 %v2524_v48, %v3460_v62  ;;  %v372_v5 = vmul.f32 %v2524_v48, %v3474_v2  ;;  %v374_v8 = vmul.f32 %v2524_v48, %v3488_v7 }
 0x388   :  { %v3417_v50 = vpack.i.bf16 %v2524_v48, %v358_v49  ;;  %v367_v51 = vmul.f32 %v358_v49, %v3415_v47  ;;  %v369_v60 = vmul.f32 %v358_v49, %v3453_v58  ;;  %v371_v1 = vmul.f32 %v358_v49, %v3466_v63 }
 0x389   :  { %v373_v6 = vmul.f32 %v358_v49, %v3480_v4 }
 0x38a   :  { %3004 = vrot.lane.b32.xlu1 %v3417_v50, %s3161_s30  ;;  %2541 = vmatprep.mubr.msk.f32.mxu1 %vm224_vm4, %v367_v51 }
 0x3fc   :  { %v3005_v52 = vpop.permute.xlu1 %3004 }
 0x3fd   :  { %v3007_v53 = vunpack.i.h.bf16 %v3005_v52  ;;  %v3006_v54 = vunpack.i.l.bf16 %v3005_v52 }
 0x3ff   :  { %v2802_v56 = vpack.c.bf16 %v3007_v53, %v3006_v54 }
 0x401   :  { %2804 = vmatprep.subr.msk.bf16.mxu1 %vm3425_vm9, %v2802_v56 }
 0x402   :  { %2807 = vmatpush3.bf16.xpose.msk.msra.mxu1 %vm3425_vm9, %v2802_v56 }
 0x403   :  { %2810 = vmatprep.subr.msk.bf16.mxu1 %vm3425_vm9, %v2802_v56 }
 0x40a   :  { %2813 = vmatpush3.bf16.xpose.msk.msra.mxu1 %vm3425_vm9, %v2802_v56 }
 0x40b   :  { %2816 = vmatprep.subr.msk.bf16.mxu1 %vm3425_vm9, %v2802_v56 }
 0x412   :  { %2819 = vmatpush3.bf16.xpose.msk.msra.mxu1 %vm3425_vm9, %v2802_v56 }
 0x413   :  { %2822 = vmatprep.subr.msk.bf16.mxu1 %vm3425_vm9, %v2802_v56 }
 0x41a   :  { %2825 = vmatpush3.bf16.xpose.msk.msra.mxu1 %vm3425_vm9, %v2802_v56 }
 0x421   :  { %2542 = vmatmul.mubr.msk.f32.vlgmr.msra.gmra.mrb[2].mxu1 %vm224_vm4, %v368_v59 }
 0x422   :  { %2544 = vmatprep.mubr.msk.f32.mxu1 %vm224_vm4, %v369_v60 }
 0x425   :  { %2545 = vmatmul.mubr.msk.f32.gmra.mrb[4].mxu1 %vm224_vm4, %v370_v0 }
 0x426   :  { %2547 = vmatprep.mubr.msk.f32.mxu1 %vm224_vm4, %v371_v1 }
 0x429   :  { %2548 = vmatmul.mubr.msk.f32.gmra.mrb[6].mxu1 %vm224_vm4, %v372_v5 }
 0x42a   :  { %2550 = vmatprep.mubr.msk.f32.mxu1 %vm224_vm4, %v373_v6 }
 0x42d   :  { %2551 = vmatmul.mubr.msk.f32.gmra.mrb[8].mxu1 %vm224_vm4, %v374_v8 }
 0x4f4   :  { %v2543_v11 = vpop.f32.mrb[2].mxu1 }
 0x4f5   :  { %v481_v12 = vadd.f32 %v2543_v11, %v3497_v9  ;;  %v475_v13 = vpop.f32.mrb[3].mxu1 }
 0x4f6   :  { %v476_v14 = vadd.f32 %v475_v13, %v3502_v10 }
 0x4f7   :  { %v518_v16 = vsel %vm514_vm10, %v481_v12, -inf }
 0x4f8   :  { %519 = vmax.xlane.f32.xlu0 %v518_v16  ;;  %v2546_v17 = vpop.f32.mrb[4].mxu1  ;;  %v515_v19 = vsel %vm514_vm10, %v476_v14, -inf }
 0x4f9   :  { %v491_v20 = vadd.f32 %v2546_v17, %v3509_v15  ;;  %v485_v21 = vpop.f32.mrb[5].mxu1  ;;  %516 = vmax.xlane.f32.xlu1 %v515_v19 }
 0x4fa   :  { %v486_v22 = vadd.f32 %v485_v21, %v3515_v18 }
 0x4fb   :  { %v524_v23 = vsel %vm514_vm10, %v491_v20, -inf }
 0x4fc   :  { %525 = vmax.xlane.f32.xlu0 %v524_v23  ;;  %v2549_v25 = vpop.f32.mrb[6].mxu1  ;;  %v521_v28 = vsel %vm514_vm10, %v486_v22, -inf }
 0x4fd   :  { %v495_v26 = vpop.f32.mrb[7].mxu1  ;;  %v501_v27 = vadd.f32 %v2549_v25, %v3524_v24 }
 0x4fe   :  { %v496_v32 = vadd.f32 %v495_v26, %v3531_v29 }
 0x4ff   :  { %v530_v33 = vsel %vm514_vm10, %v501_v27, -inf }
 0x500   :  { %v2552_v30 = vpop.f32.mrb[8].mxu1  ;;  %522 = vmax.xlane.f32.xlu0 %v521_v28  ;;  %v527_v36 = vsel %vm514_vm10, %v496_v32, -inf }
 0x501   :  { %v505_v31 = vpop.f32.mrb[9].mxu1  ;;  %v511_v38 = vadd.f32 %v2552_v30, %v3545_v37 }
 0x502   :  { %v506_v35 = vadd.f32 %v505_v31, %v3538_v34 }
 0x503   :  { %v536_v40 = vsel %vm514_vm10, %v511_v38, -inf }
 0x504   :  { %531 = vmax.xlane.f32.xlu0 %v530_v33  ;;  %v533_v39 = vsel %vm514_vm10, %v506_v35, -inf }
 0x508   :  { %528 = vmax.xlane.f32.xlu0 %v527_v36 }
 0x50c   :  { %534 = vmax.xlane.f32.xlu0 %v533_v39 }
 0x510   :  { %537 = vmax.xlane.f32.xlu0 %v536_v40 }
 0x585   :  { %v520_v41 = vpop.xlane.xlu0 %519 }
 0x586   :  { %v540_v42 = vsub.f32 %v481_v12, %v520_v41  ;;  %v517_v43 = vpop.xlane.xlu1 %516 }
 0x587   :  { %v539_v44 = vsub.f32 %v476_v14, %v517_v43 }
 0x588   :  { %v549_v45 = vmul.f32 1.442695, %v540_v42 }
 0x589   :  { %v547_v46 = vmul.f32 1.442695, %v539_v44  ;;  %v526_v48 = vpop.xlane.xlu0 %525 }
 0x58a   :  { %3031 = vpow2.f32 %v549_v45  ;;  %v542_v49 = vsub.f32 %v491_v20, %v526_v48 }
 0x58b   :  { %3033 = vpow2.f32 %v547_v46 }
 0x58c   :  { %v553_v51 = vmul.f32 1.442695, %v542_v49 }
 0x58d   :  { %v523_v52 = vpop.xlane.xlu0 %522 }
 0x58e   :  { %3035 = vpow2.f32 %v553_v51  ;;  %v541_v53 = vsub.f32 %v486_v22, %v523_v52 }
 0x590   :  { %v551_v54 = vmul.f32 1.442695, %v541_v53 }
 0x591   :  { %v532_v56 = vpop.xlane.xlu0 %531 }
 0x592   :  { %3037 = vpow2.f32 %v551_v54  ;;  %v544_v59 = vsub.f32 %v501_v27, %v532_v56 }
 0x594   :  { %v3550_v60 = vpop.eup %3031  ;;  %v557_v0 = vmul.f32 1.442695, %v544_v59 }
 0x595   :  { %v3034_v1 = vpop.eup %3033  ;;  %v529_v5 = vpop.xlane.xlu0 %528  ;;  %v566_v6 = vsel %vm514_vm10, %v3550_v60, 0.0 }
 0x596   :  { %3039 = vpow2.f32 %v557_v0  ;;  %v543_v8 = vsub.f32 %v496_v32, %v529_v5  ;;  %567 = vadd.xlane.f32.xlu0 %v566_v6  ;;  %v563_v11 = vsel %vm514_vm10, %v3034_v1, 0.0 }
 0x597   :  { %564 = vadd.xlane.f32.xlu1 %v563_v11 }
 0x598   :  { %v3555_v12 = vpop.eup %3035  ;;  %v555_v13 = vmul.f32 1.442695, %v543_v8 }
 0x599   :  { %v535_v14 = vpop.xlane.xlu0 %534  ;;  %v572_v16 = vsel %vm514_vm10, %v3555_v12, 0.0 }
 0x59a   :  { %3041 = vpow2.f32 %v555_v13  ;;  %v545_v17 = vsub.f32 %v506_v35, %v535_v14  ;;  %573 = vadd.xlane.f32.xlu0 %v572_v16  ;;  %v769_v16 = vld [vmem:[%s4031_s7 + $0x8] sm:$0xff] }
 0x59c   :  { %v3038_v19 = vpop.eup %3037  ;;  %v559_v20 = vmul.f32 1.442695, %v545_v17 }
 0x59d   :  { %v538_v21 = vpop.xlane.xlu0 %537  ;;  %v569_v22 = vsel %vm514_vm10, %v3038_v19, 0.0 }
 0x59e   :  { %3043 = vpow2.f32 %v559_v20  ;;  %v546_v23 = vsub.f32 %v511_v38, %v538_v21  ;;  %570 = vadd.xlane.f32.xlu1 %v569_v22  ;;  %v771_v20 = vld [vmem:[%s4031_s7 + $0x18] sm:$0xff]  ;;  %v3591_v22 = vld [vmem:[%s4029_s5 + $0x8] sm:$0xff] }
 0x5a0   :  { %v3040_v25 = vpop.eup %3039  ;;  %v561_v26 = vmul.f32 1.442695, %v546_v23 }
 0x5a1   :  { %v578_v27 = vsel %vm514_vm10, %v3040_v25, 0.0 }
 0x5a2   :  { %3045 = vpow2.f32 %v561_v26  ;;  %579 = vadd.xlane.f32.xlu0 %v578_v27  ;;  %v3601_v27 = vld [vmem:[%s4029_s5 + $0x18] sm:$0xff] }
 0x5a4   :  { %v3042_v28 = vpop.eup %3041 }
 0x5a5   :  { %v575_v30 = vsel %vm514_vm10, %v3042_v28, 0.0 }
 0x5a6   :  { %576 = vadd.xlane.f32.xlu1 %v575_v30  ;;  %v3607_v30 = vld [vmem:[%s4029_s5 + $0x10] sm:$0xff] }
 0x5a8   :  { %v3044_v31 = vpop.eup %3043 }
 0x5a9   :  { %v581_v32 = vsel %vm514_vm10, %v3044_v31, 0.0 }
 0x5aa   :  { %582 = vadd.xlane.f32.xlu0 %v581_v32 }
 0x5ac   :  { %v3046_v33 = vpop.eup %3045 }
 0x5ad   :  { %v584_v35 = vsel %vm514_vm10, %v3046_v33, 0.0 }
 0x5ae   :  { %585 = vadd.xlane.f32.xlu0 %v584_v35 }
 0x5b7   :  { %3009 = vrot.lane.b32.xlu1 %v3417_v50, %s3162_s1 }
 0x623   :  { %v568_v41 = vpop.xlane.xlu0 %567 }
 0x624   :  { %v565_v36 = vpop.xlane.xlu1 %564 }
 0x625   :  { %3047 = vrcp.f32 %v565_v36 }
 0x626   :  { %3049 = vrcp.f32 %v568_v41  ;;  %v3622_v41 = vld [vmem:[%s4029_s5 + $0x20] sm:$0xff] }
 0x627   :  { %v574_v44 = vpop.xlane.xlu0 %573 }
 0x62b   :  { %v571_v39 = vpop.xlane.xlu1 %570 }
 0x62c   :  { %3051 = vrcp.f32 %v571_v39 }
 0x62d   :  { %3053 = vrcp.f32 %v574_v44 }
 0x62f   :  { %v3048_v38 = vpop.eup %3047  ;;  %v580_v49 = vpop.xlane.xlu0 %579 }
 0x630   :  { %v603_v40 = vmul.f32 %v3048_v38, %v3034_v1  ;;  %v3050_v52 = vpop.eup %3049  ;;  %v3615_v38 = vld [vmem:[%s4029_s5 + $0x28] sm:$0xff] }
 0x631   :  { %v604_v54 = vmul.f32 %v3050_v52, %v3550_v60 }
 0x632   :  { %2569 = vmatprep.mubr.msk.f32.mxu0 %vm514_vm10, %v603_v40 }
 0x633   :  { %v577_v42 = vpop.xlane.xlu1 %576 }
 0x634   :  { %3055 = vrcp.f32 %v577_v42 }
 0x635   :  { %3057 = vrcp.f32 %v580_v49 }
 0x636   :  { %v3052_v53 = vpop.eup %3051 }
 0x637   :  { %v3010_v43 = vpop.permute.xlu1 %3009  ;;  %v583_v50 = vpop.xlane.xlu0 %582  ;;  %v605_v59 = vmul.f32 %v3052_v53, %v3038_v19  ;;  %v770_v19 = vld [vmem:[%s4031_s7 + $0x10] sm:$0xff] }
 0x638   :  { %v3012_v45 = vunpack.i.h.bf16 %v3010_v43  ;;  %v3011_v46 = vunpack.i.l.bf16 %v3010_v43  ;;  %3059 = vrcp.f32 %v583_v50  ;;  %v3054_v56 = vpop.eup %3053  ;;  %v2846_v21 = vpack.c.bf16 %v771_v20, %v770_v19  ;;  %v3637_v53 = vld [vmem:[%s4029_s5 + $0x30] sm:$0xff] }
 0x639   :  { %v606_v1 = vmul.f32 %v3054_v56, %v3555_v12  ;;  %v768_v12 = vld [vmem:[%s4031_s7] sm:$0xff] }
 0x63a   :  { %v2826_v48 = vpack.c.bf16 %v3012_v45, %v3011_v46  ;;  %v2842_v17 = vpack.c.bf16 %v769_v16, %v768_v12  ;;  %v2257_v12 = vld [vmem:[%s4032_s8] ss:$0 sm:$0xff] }
 0x63b   :  { %v586_v51 = vpop.xlane.xlu0 %585 }
 0x63c   :  { %2827 = vmatprep.subr.bf16.mxu0 %v2826_v48  ;;  %3061 = vrcp.f32 %v586_v51  ;;  %2843 = vmatprep.subr.bf16.mxu1 %v2842_v17  ;;  %v3631_v51 = vld [vmem:[%s4029_s5 + $0x38] sm:$0xff] }
 0x63d   :  { %2829 = vmatpush3.bf16.msra.mxu0 %v2826_v48  ;;  %2845 = vmatpush3.bf16.msra.mxu1 %v2842_v17 }
 0x63e   :  { %2831 = vmatprep.subr.bf16.mxu0 %v2826_v48  ;;  %v3056_v0 = vpop.eup %3055  ;;  %2847 = vmatprep.subr.bf16.mxu1 %v2846_v21 }
 0x63f   :  { %v3058_v5 = vpop.eup %3057  ;;  %v607_v6 = vmul.f32 %v3056_v0, %v3042_v28 }
 0x640   :  { %v608_v11 = vmul.f32 %v3058_v5, %v3040_v25  ;;  %v3596_v25 = vld [vmem:[%s4029_s5] sm:$0xff] }
 0x641   :  { %2833 = vmatpush3.bf16.msra.mxu0 %v2826_v48  ;;  %2849 = vmatpush3.bf16.msra.mxu1 %v2846_v21 }
 0x642   :  { %2835 = vmatprep.subr.bf16.mxu0 %v2826_v48  ;;  %v3060_v8 = vpop.eup %3059 }
 0x643   :  { %v609_v14 = vmul.f32 %v3060_v8, %v3044_v31 }
 0x645   :  { %2837 = vmatpush3.bf16.msra.mxu0 %v2826_v48 }
 0x646   :  { %2839 = vmatprep.subr.bf16.mxu0 %v2826_v48  ;;  %v3062_v13 = vpop.eup %3061 }
 0x647   :  { %v610_v60 = vmul.f32 %v3062_v13, %v3046_v33 }
 0x649   :  { %2841 = vmatpush3.bf16.msra.mxu0 %v2826_v48 }
 0x64c   :  { %2570 = vmatmul.mubr.msk.f32.vlgmr.msra.gmra.mrb[4].mxu0 %vm514_vm10, %v604_v54 }
 0x64d   :  { %2572 = vmatprep.mubr.msk.f32.mxu0 %vm514_vm10, %v605_v59 }
 0x650   :  { %2573 = vmatmul.mubr.msk.f32.gmra.mrb[6].mxu0 %vm514_vm10, %v606_v1 }
 0x651   :  { %2575 = vmatprep.mubr.msk.f32.mxu0 %vm514_vm10, %v607_v6 }
 0x654   :  { %2576 = vmatmul.mubr.msk.f32.gmra.mrb[8].mxu0 %vm514_vm10, %v608_v11 }
 0x655   :  { %2578 = vmatprep.mubr.msk.f32.mxu0 %vm514_vm10, %v609_v14 }
 0x658   :  { %2579 = vmatmul.mubr.msk.f32.gmra.mrb[10].mxu0 %vm514_vm10, %v610_v60 }
 0x71f   :  { %v2571_v23 = vpop.f32.mrb[4].mxu0 }
 0x720   :  { %v707_v26 = vpop.f32.mrb[5].mxu0  ;;  %v747_v28 = vmul.f32 %v2571_v23, %v3591_v22 }
 0x721   :  { %v746_v31 = vmul.f32 %v707_v26, %v3596_v25 }
 0x722   :  { %v761_v39 = vsel %vm224_vm4, %v747_v28, 0.0 }
 0x723   :  { %v2574_v32 = vpop.f32.mrb[6].mxu0  ;;  %v754_v42 = vsel %vm224_vm4, %v746_v31, 0.0 }
 0x724   :  { %v749_v33 = vmul.f32 %v2574_v32, %v3601_v27  ;;  %v717_v35 = vpop.f32.mrb[7].mxu0 }
 0x725   :  { %v748_v36 = vmul.f32 %v717_v35, %v3607_v30 }
 0x726   :  { %v762_v40 = vsel %vm224_vm4, %v749_v33, 0.0 }
 0x727   :  { %v763_v43 = vadd.f32 %v762_v40, %v761_v39  ;;  %v755_v44 = vsel %vm224_vm4, %v748_v36, 0.0  ;;  %v2577_v45 = vpop.f32.mrb[8].mxu0 }
 0x728   :  { %v756_v46 = vadd.f32 %v755_v44, %v754_v42  ;;  %v751_v48 = vmul.f32 %v2577_v45, %v3615_v38  ;;  %v727_v49 = vpop.f32.mrb[9].mxu0  ;;  %v922_v42 = vld [vmem:[%s4033_s9] sm:$0xff]  ;;  %v924_v44 = vld [vmem:[%s4033_s9 + $0x10] sm:$0xff] }
 0x729   :  { %v750_v50 = vmul.f32 %v727_v49, %v3622_v41  ;;  %v1032_v49 = vld [vmem:[%s4035_s11] sm:$0xff] }
 0x72a   :  { %v764_v52 = vsel %vm224_vm4, %v751_v48, 0.0 }
 0x72b   :  { %v765_v54 = vadd.f32 %v764_v52, %v763_v43  ;;  %v757_v56 = vsel %vm224_vm4, %v750_v50, 0.0  ;;  %v2580_v59 = vpop.f32.mrb[10].mxu0  ;;  %v923_v43 = vld [vmem:[%s4033_s9 + $0x8] sm:$0xff] }
 0x72c   :  { %v758_v0 = vadd.f32 %v757_v56, %v756_v46  ;;  %v753_v1 = vmul.f32 %v2580_v59, %v3631_v51  ;;  %v737_v5 = vpop.f32.mrb[11].mxu0  ;;  %v2850_v45 = vpack.c.bf16 %v923_v43, %v922_v42  ;;  %v925_v46 = vld [vmem:[%s4033_s9 + $0x18] sm:$0xff]  ;;  %v1033_v50 = vld [vmem:[%s4035_s11 + $0x8] sm:$0xff]  ;;  %v1034_v42 = vld [vmem:[%s4035_s11 + $0x10] sm:$0xff] }
 0x72d   :  { %v752_v6 = vmul.f32 %v737_v5, %v3637_v53  ;;  %v2854_v48 = vpack.c.bf16 %v925_v46, %v924_v44  ;;  %v2858_v52 = vpack.c.bf16 %v1033_v50, %v1032_v49  ;;  %v1037_v44 = vld [vmem:[%s4035_s11 + $0x28] sm:$0xff]  ;;  %v1038_v46 = vld [vmem:[%s4035_s11 + $0x30] sm:$0xff]  ;;  %v1040_v50 = vld [vmem:[%s4035_s11 + $0x40] sm:$0xff] }
 0x72e   :  { %v766_v8 = vsel %vm224_vm4, %v753_v1, 0.0  ;;  %2851 = vmatprep.subr.bf16.mxu0 %v2850_v45 }
 0x72f   :  { %v767_v11 = vadd.f32 %v766_v8, %v765_v54  ;;  %v759_v13 = vsel %vm224_vm4, %v752_v6, 0.0  ;;  %2853 = vmatpush3.bf16.msra.mxu0 %v2850_v45  ;;  %2859 = vmatprep.subr.bf16.mxu1 %v2858_v52 }
 0x730   :  { %v760_v14 = vadd.f32 %v759_v13, %v758_v0  ;;  %2855 = vmatprep.subr.bf16.mxu0 %v2854_v48 }
 0x732   :  { %2589 = vmatprep.mubr.msk.f32.mxu1 %vm224_vm4, %v760_v14 }
 0x733   :  { %2590 = vmatmul.mubr.msk.f32.vlgmr.msra.gmra.mrb[10].mxu1 %vm224_vm4, %v767_v11  ;;  %2857 = vmatpush3.bf16.msra.mxu0 %v2854_v48  ;;  %v1039_v48 = vld [vmem:[%s4035_s11 + $0x38] sm:$0xff] }
 0x734   :  { %2861 = vmatpush3.bf16.msra.mxu1 %v2858_v52  ;;  %v2870_v49 = vpack.c.bf16 %v1039_v48, %v1038_v46  ;;  %v1041_v52 = vld [vmem:[%s4035_s11 + $0x48] sm:$0xff]  ;;  %v2263_v48 = vld [vmem:[%s4064_s22] ss:$0 sm:$0xff] }
 0x806   :  { %v2591_v60 = vpop.f32.mrb[10].mxu1 }
 0x807   :  { %v844_v16 = vpop.f32.mrb[11].mxu1  ;;  %v854_v17 = vadd.f32 %v2591_v60, %v3384_v3 }
 0x808   :  { %v853_v19 = vadd.f32 %v844_v16, %v3377_v61 }
 0x809   :  { %v3653_v21 = vadd.f32 %v2257_v12, %v854_v17 }
 0x80a   :  { %v3651_v20 = vadd.f32 %v2257_v12, %v853_v19 }
 0x80b   :  { %v869_v26 = vsel %vm224_vm4, %v3653_v21, 0.0 }
 0x80c   :  { %v866_v23 = vsel %vm224_vm4, %v3651_v20, 0.0 }
 0x80d   :  { %867 = vadd.xlane.f32.xlu0 %v866_v23  ;;  %v2258_v23 = vld [vmem:[%s4039_s15] ss:$0 sm:$0xff] }
 0x811   :  { %870 = vadd.xlane.f32.xlu0 %v869_v26 }
 0x89a   :  { %v868_v28 = vpop.xlane.xlu0 %867 }
 0x89b   :  { %v872_v31 = vmul.f32 0.03125, %v868_v28 }
 0x89d   :  { %v874_v32 = vsub.f32 %v3651_v20, %v872_v31  ;;  %v2259_v31 = vld [vmem:[%s4040_s16] ss:$0 sm:$0xff] }
 0x89e   :  { %v871_v33 = vpop.xlane.xlu0 %870 }
 0x89f   :  { %v873_v3 = vmul.f32 0.03125, %v871_v33  ;;  %v876_v35 = vmul.f32 %v874_v32, %v874_v32  ;;  %v892_v26 = vmul.f32 %v2258_v23, %v874_v32  ;;  %v1035_v32 = vld [vmem:[%s4035_s11 + $0x18] sm:$0xff] }
 0x8a0   :  { %v2862_v43 = vpack.c.bf16 %v1035_v32, %v1034_v42 }
 0x8a1   :  { %v875_v61 = vsub.f32 %v3653_v21, %v873_v3  ;;  %v878_v36 = vsel %vm224_vm4, %v876_v35, 0.0 }
 0x8a2   :  { %879 = vadd.xlane.f32.xlu1 %v878_v36  ;;  %2863 = vmatprep.subr.bf16.mxu1 %v2862_v43 }
 0x8a3   :  { %v877_v39 = vmul.f32 %v875_v61, %v875_v61  ;;  %v893_v35 = vmul.f32 %v2258_v23, %v875_v61  ;;  %2865 = vmatpush3.bf16.msra.mxu1 %v2862_v43  ;;  %v1036_v61 = vld [vmem:[%s4035_s11 + $0x20] sm:$0xff] }
 0x8a4   :  { %v2866_v45 = vpack.c.bf16 %v1037_v44, %v1036_v61 }
 0x8a5   :  { %v881_v40 = vsel %vm224_vm4, %v877_v39, 0.0 }
 0x8a6   :  { %882 = vadd.xlane.f32.xlu0 %v881_v40  ;;  %2867 = vmatprep.subr.bf16.mxu1 %v2866_v45 }
 0x8a7   :  { %2869 = vmatpush3.bf16.msra.mxu1 %v2866_v45 }
 0x8a8   :  { %2871 = vmatprep.subr.bf16.mxu1 %v2870_v49 }
 0x8ab   :  { %2873 = vmatpush3.bf16.msra.mxu1 %v2870_v49 }
 0x92f   :  { %v880_v54 = vpop.xlane.xlu1 %879 }
 0x930   :  { %v884_v56 = vmul.f32 0.03125, %v880_v54  ;;  %v1042_v54 = vld [vmem:[%s4035_s11 + $0x50] sm:$0xff] }
 0x932   :  { %v894_v59 = vadd.f32 1e-05, %v884_v56  ;;  %v2874_v56 = vpack.c.bf16 %v1041_v52, %v1040_v50 }
 0x933   :  { %v883_v0 = vpop.xlane.xlu0 %882 }
 0x934   :  { %3063 = vrsqrt.f32 %v894_v59  ;;  %v885_v1 = vmul.f32 0.03125, %v883_v0  ;;  %vm898_vm11 = vcmp.eq.f32.partialorder %v894_v59, inf  ;;  %v901_v11 = vand.u32 2147483648, %v894_v59  ;;  %2875 = vmatprep.subr.bf16.mxu1 %v2874_v56 }
 0x935   :  { %vm900_vm12 = vcmp.eq.f32.partialorder %v894_v59, 0.0  ;;  %2877 = vmatpush3.bf16.msra.mxu1 %v2874_v56 }
 0x936   :  { %v895_v5 = vadd.f32 1e-05, %v885_v1  ;;  %v1044_v1 = vld [vmem:[%s4035_s11 + $0x60] sm:$0xff] }
 0x938   :  { %3065 = vrsqrt.f32 %v895_v5  ;;  %vm905_vm13 = vcmp.eq.f32.partialorder %v895_v5, inf  ;;  %v908_v16 = vand.u32 2147483648, %v895_v5  ;;  %vm907_vm14 = vcmp.eq.f32.partialorder %v895_v5, 0.0 }
 0x93e   :  { %v3064_v6 = vpop.eup %3063 }
 0x93f   :  { %v897_v8 = vmul.f32 %v3064_v6, %v894_v59 }
 0x941   :  { %v899_v13 = vsel %vm898_vm11, %v894_v59, %v897_v8  ;;  %v1043_v59 = vld [vmem:[%s4035_s11 + $0x58] sm:$0xff]  ;;  %v1046_v8 = vld [vmem:[%s4035_s11 + $0x70] sm:$0xff] }
 0x942   :  { %v902_v14 = vsel %vm900_vm12, %v901_v11, %v899_v13  ;;  %v3066_v60 = vpop.eup %3065  ;;  %v2878_v0 = vpack.c.bf16 %v1043_v59, %v1042_v54  ;;  %v1047_v11 = vld [vmem:[%s4035_s11 + $0x78] sm:$0xff] }
 0x943   :  { %3067 = vrcp.f32 %v902_v14  ;;  %v904_v12 = vmul.f32 %v3066_v60, %v895_v5  ;;  %v2886_v13 = vpack.c.bf16 %v1047_v11, %v1046_v8  ;;  %v2260_v14 = vld [vmem:[%s4034_s10] ss:$0 sm:$0xff] }
 0x944   :  { %2879 = vmatprep.subr.bf16.mxu1 %v2878_v0 }
 0x945   :  { %v906_v17 = vsel %vm905_vm13, %v895_v5, %v904_v12  ;;  %v1045_v5 = vld [vmem:[%s4035_s11 + $0x68] sm:$0xff]  ;;  %2881 = vmatpush3.bf16.msra.mxu1 %v2878_v0 }
 0x946   :  { %v909_v19 = vsel %vm907_vm14, %v908_v16, %v906_v17  ;;  %v2882_v6 = vpack.c.bf16 %v1045_v5, %v1044_v1 }
 0x947   :  { %3069 = vrcp.f32 %v909_v19 }
 0x948   :  { %2883 = vmatprep.subr.bf16.mxu1 %v2882_v6 }
 0x949   :  { %2885 = vmatpush3.bf16.msra.mxu1 %v2882_v6 }
 0x94a   :  { %2887 = vmatprep.subr.bf16.mxu1 %v2886_v13 }
 0x94d   :  { %v3068_v28 = vpop.eup %3067  ;;  %2889 = vmatpush3.bf16.msra.mxu1 %v2886_v13 }
 0x94e   :  { %v911_v33 = vmul.f32 %v3068_v28, %v892_v26 }
 0x950   :  { %v920_v3 = vadd.f32 %v2259_v31, %v911_v33 }
 0x951   :  { %v3070_v36 = vpop.eup %3069 }
 0x952   :  { %2600 = vmatprep.mubr.msk.f32.mxu0 %vm224_vm4, %v920_v3  ;;  %v913_v39 = vmul.f32 %v3070_v36, %v893_v35 }
 0x954   :  { %v921_v40 = vadd.f32 %v2259_v31, %v913_v39 }
 0x956   :  { %2601 = vmatmul.mubr.msk.f32.vlgmr.msra.gmra.mrb[12].mxu0 %vm224_vm4, %v921_v40 }
 0xa29   :  { %v2602_v60 = vpop.f32.mrb[12].mxu0 }
 0xa2a   :  { %v1011_v12 = vadd.f32 %v2602_v60, %v2260_v14  ;;  %v1005_v16 = vpop.f32.mrb[13].mxu0 }
 0xa2b   :  { %v1006_v17 = vadd.f32 %v2260_v14, %v1005_v16  ;;  %v2268_v16 = vld [vmem:[%s4030_s6 + $0x20] sm:$0xff] }
 0xa2c   :  { %v1017_v19 = vmul.f32 0.044715, %v1011_v12  ;;  %v1015_v44 = vmul.f32 0.5, %v1011_v12 }
 0xa2d   :  { %v1016_v23 = vmul.f32 0.044715, %v1006_v17  ;;  %v1014_v43 = vmul.f32 0.5, %v1006_v17 }
 0xa2e   :  { %v1019_v26 = vmul.f32 %v1017_v19, %v1011_v12  ;;  %v2270_v19 = vld [vmem:[%s4030_s6 + $0x30] sm:$0xff] }
 0xa2f   :  { %v1018_v28 = vmul.f32 %v1016_v23, %v1006_v17 }
 0xa30   :  { %v1021_v31 = vmul.f32 %v1019_v26, %v1011_v12  ;;  %v2271_v26 = vld [vmem:[%s4030_s6 + $0x38] sm:$0xff] }
 0xa31   :  { %v1020_v33 = vmul.f32 %v1018_v28, %v1006_v17  ;;  %v2894_v28 = vpack.c.bf16 %v2271_v26, %v2270_v19 }
 0xa32   :  { %v1023_v3 = vadd.f32 %v1021_v31, %v1011_v12 }
 0xa33   :  { %v1022_v35 = vadd.f32 %v1020_v33, %v1006_v17  ;;  %v2269_v17 = vld [vmem:[%s4030_s6 + $0x28] sm:$0xff] }
 0xa34   :  { %v1025_v36 = vmul.f32 0.7978845, %v1023_v3  ;;  %v2890_v23 = vpack.c.bf16 %v2269_v17, %v2268_v16 }
 0xa35   :  { %v1024_v39 = vmul.f32 0.7978845, %v1022_v35 }
 0xa36   :  { %3071 = vtanh.f32 %v1025_v36  ;;  %2891 = vmatprep.subr.bf16.mxu0 %v2890_v23 }
 0xa37   :  { %3073 = vtanh.f32 %v1024_v39  ;;  %2893 = vmatpush3.bf16.msra.mxu0 %v2890_v23 }
 0xa38   :  { %2895 = vmatprep.subr.bf16.mxu0 %v2894_v28 }
 0xa3b   :  { %2897 = vmatpush3.bf16.msra.mxu0 %v2894_v28 }
 0xa40   :  { %v3072_v40 = vpop.eup %3071 }
 0xa41   :  { %v3074_v42 = vpop.eup %3073  ;;  %v1029_v32 = vadd.f32 1.0, %v3072_v40 }
 0xa42   :  { %v1028_v61 = vadd.f32 1.0, %v3074_v42 }
 0xa43   :  { %v1031_v46 = vmul.f32 %v1029_v32, %v1015_v44 }
 0xa44   :  { %v1030_v45 = vmul.f32 %v1028_v61, %v1014_v43 }
 0xa46   :  { %2635 = vmatprep.mubr.f32.mxu1 %v1030_v45 }
 0xa47   :  { %2636 = vmatmul.mubr.f32.vlgmr.msra.gmra.mrb[12].mxu1 %v1031_v46 }
 0xb1a   :  { %v2637_v49 = vpop.f32.mrb[12].mxu1 }
 0xb1b   :  { %v1121_v50 = vpop.f32.mrb[13].mxu1  ;;  %v1127_v52 = vadd.f32 %v2637_v49, %v2263_v48 }
 0xb1c   :  { %v1122_v54 = vadd.f32 %v2263_v48, %v1121_v50  ;;  %v2266_v50 = vld [vmem:[%s4037_s13 + $0x1] ss:$0 sm:$0xff] }
 0xb1d   :  { %v3741_v59 = vadd.f32 %v1127_v52, %v3653_v21 }
 0xb1e   :  { %v3738_v56 = vadd.f32 %v1122_v54, %v3651_v20 }
 0xb1f   :  { %v1139_v1 = vsel %vm224_vm4, %v3741_v59, 0.0 }
 0xb20   :  { %v1136_v0 = vsel %vm224_vm4, %v3738_v56, 0.0 }
 0xb21   :  { %1137 = vadd.xlane.f32.xlu0 %v1136_v0  ;;  %v2267_v0 = vld [vmem:[%s4038_s14 + $0x1] ss:$0 sm:$0xff] }
 0xb25   :  { %1140 = vadd.xlane.f32.xlu0 %v1139_v1 }
 0xbae   :  { %v1138_v5 = vpop.xlane.xlu0 %1137 }
 0xbaf   :  { %v1142_v6 = vmul.f32 0.03125, %v1138_v5 }
 0xbb1   :  { %v1144_v8 = vsub.f32 %v3738_v56, %v1142_v6 }
 0xbb2   :  { %v1141_v11 = vpop.xlane.xlu0 %1140 }
 0xbb3   :  { %v1143_v13 = vmul.f32 0.03125, %v1141_v11  ;;  %v1146_v14 = vmul.f32 %v1144_v8, %v1144_v8  ;;  %v1162_v52 = vmul.f32 %v2266_v50, %v1144_v8 }
 0xbb5   :  { %v1145_v20 = vsub.f32 %v3741_v59, %v1143_v13  ;;  %v1148_v21 = vsel %vm224_vm4, %v1146_v14, 0.0 }
 0xbb6   :  { %1149 = vadd.xlane.f32.xlu0 %v1148_v21 }
 0xbb7   :  { %v1147_v60 = vmul.f32 %v1145_v20, %v1145_v20  ;;  %v1163_v6 = vmul.f32 %v2266_v50, %v1145_v20 }
 0xbb9   :  { %v1151_v12 = vsel %vm224_vm4, %v1147_v60, 0.0 }
 0xbba   :  { %1152 = vadd.xlane.f32.xlu0 %v1151_v12 }
 0xc43   :  { %v1150_v31 = vpop.xlane.xlu0 %1149 }
 0xc44   :  { %v1154_v33 = vmul.f32 0.03125, %v1150_v31 }
 0xc46   :  { %v1164_v3 = vadd.f32 1e-05, %v1154_v33 }
 0xc47   :  { %v1153_v35 = vpop.xlane.xlu0 %1152 }
 0xc48   :  { %3075 = vrsqrt.f32 %v1164_v3  ;;  %v1155_v36 = vmul.f32 0.03125, %v1153_v35  ;;  %vm1168_vm15 = vcmp.eq.f32.partialorder %v1164_v3, inf  ;;  %v1171_v32 = vand.u32 2147483648, %v1164_v3 }
 0xc49   :  { %vm1170_vm0 = vcmp.eq.f32.partialorder %v1164_v3, 0.0 }
 0xc4a   :  { %v1165_v39 = vadd.f32 1e-05, %v1155_v36 }
 0xc4c   :  { %3077 = vrsqrt.f32 %v1165_v39  ;;  %vm1175_vm1 = vcmp.eq.f32.partialorder %v1165_v39, inf  ;;  %v1178_v46 = vand.u32 2147483648, %v1165_v39  ;;  %vm1177_vm2 = vcmp.eq.f32.partialorder %v1165_v39, 0.0 }
 0xc52   :  { %v3076_v40 = vpop.eup %3075 }
 0xc53   :  { %v1167_v42 = vmul.f32 %v3076_v40, %v1164_v3 }
 0xc55   :  { %v1169_v43 = vsel %vm1168_vm15, %v1164_v3, %v1167_v42 }
 0xc56   :  { %v1172_v61 = vsel %vm1170_vm0, %v1171_v32, %v1169_v43  ;;  %v3078_v44 = vpop.eup %3077 }
 0xc57   :  { %3079 = vrcp.f32 %v1172_v61  ;;  %v1174_v45 = vmul.f32 %v3078_v44, %v1165_v39 }
 0xc59   :  { %v1176_v48 = vsel %vm1175_vm1, %v1165_v39, %v1174_v45 }
 0xc5a   :  { %v1179_v49 = vsel %vm1177_vm2, %v1178_v46, %v1176_v48 }
 0xc5b   :  { %3081 = vrcp.f32 %v1179_v49 }
 0xc61   :  { %v3080_v54 = vpop.eup %3079 }
 0xc62   :  { %v1181_v1 = vmul.f32 %v3080_v54, %v1162_v52 }
 0xc64   :  { %v1190_v5 = vadd.f32 %v2267_v0, %v1181_v1 }
 0xc65   :  { %v3082_v11 = vpop.eup %3081 }
 0xc66   :  { %2646 = vmatprep.mubr.msk.f32.mxu0 %vm224_vm4, %v1190_v5  ;;  %v1183_v13 = vmul.f32 %v3082_v11, %v1163_v6 }
 0xc68   :  { %v1191_v14 = vadd.f32 %v2267_v0, %v1183_v13 }
 0xc6a   :  { %2647 = vmatmul.mubr.msk.f32.vlgmr.msra.gmra.mrb[14].mxu0 %vm224_vm4, %v1191_v14 }
 0xd3d   :  { %v2648_v21 = vpop.f32.mrb[14].mxu0 }
 0xd3e   :  { %v1269_v60 = vpop.f32.mrb[15].mxu0  ;;  %v1281_v26 = vmul.f32 %v2648_v21, %v3460_v62  ;;  %v1283_v31 = vmul.f32 %v2648_v21, %v3474_v2 }
 0xd3f   :  { %v3771_v12 = vpack.i.bf16 %v2648_v21, %v1269_v60  ;;  %v1278_v8 = vmul.f32 %v1269_v60, %v3415_v47  ;;  %v1279_v47 = vmul.f32 %v2648_v21, %v3448_v57  ;;  %v1280_v23 = vmul.f32 %v1269_v60, %v3453_v58 }
 0xd40   :  { %v1282_v28 = vmul.f32 %v1269_v60, %v3466_v63  ;;  %v1284_v55 = vmul.f32 %v1269_v60, %v3480_v4  ;;  %v1285_v57 = vmul.f32 %v2648_v21, %v3488_v7 }
 0xd41   :  { %3014 = vrot.lane.b32.xlu0 %v3771_v12, %s3161_s30  ;;  %2665 = vmatprep.mubr.msk.f32.mxu0 %vm224_vm4, %v1278_v8 }
 0xdb3   :  { %v3015_v16 = vpop.permute.xlu0 %3014 }
 0xdb4   :  { %v3017_v20 = vunpack.i.h.bf16 %v3015_v16  ;;  %v3016_v17 = vunpack.i.l.bf16 %v3015_v16 }
 0xdb6   :  { %v2898_v19 = vpack.c.bf16 %v3017_v20, %v3016_v17 }
 0xdb8   :  { %2900 = vmatprep.subr.msk.bf16.mxu0 %vm3425_vm9, %v2898_v19 }
 0xdb9   :  { %2903 = vmatpush3.bf16.xpose.msk.msra.mxu0 %vm3425_vm9, %v2898_v19 }
 0xdba   :  { %2906 = vmatprep.subr.msk.bf16.mxu0 %vm3425_vm9, %v2898_v19 }
 0xdc1   :  { %2909 = vmatpush3.bf16.xpose.msk.msra.mxu0 %vm3425_vm9, %v2898_v19 }
 0xdc2   :  { %2912 = vmatprep.subr.msk.bf16.mxu0 %vm3425_vm9, %v2898_v19 }
 0xdc9   :  { %2915 = vmatpush3.bf16.xpose.msk.msra.mxu0 %vm3425_vm9, %v2898_v19 }
 0xdca   :  { %2918 = vmatprep.subr.msk.bf16.mxu0 %vm3425_vm9, %v2898_v19 }
 0xdd1   :  { %2921 = vmatpush3.bf16.xpose.msk.msra.mxu0 %vm3425_vm9, %v2898_v19 }
 0xdd8   :  { %2666 = vmatmul.mubr.msk.f32.vlgmr.msra.gmra.mrb[16].mxu0 %vm224_vm4, %v1279_v47 }
 0xdd9   :  { %2668 = vmatprep.mubr.msk.f32.mxu0 %vm224_vm4, %v1280_v23 }
 0xddc   :  { %2669 = vmatmul.mubr.msk.f32.gmra.mrb[18].mxu0 %vm224_vm4, %v1281_v26 }
 0xddd   :  { %2671 = vmatprep.mubr.msk.f32.mxu0 %vm224_vm4, %v1282_v28 }
 0xde0   :  { %2672 = vmatmul.mubr.msk.f32.gmra.mrb[20].mxu0 %vm224_vm4, %v1283_v31 }
 0xde1   :  { %2674 = vmatprep.mubr.msk.f32.mxu0 %vm224_vm4, %v1284_v55 }
 0xde4   :  { %2675 = vmatmul.mubr.msk.f32.gmra.mrb[22].mxu0 %vm224_vm4, %v1285_v57 }
 0xeab   :  { %v2667_v58 = vpop.f32.mrb[16].mxu0 }
 0xeac   :  { %v1392_v62 = vadd.f32 %v2667_v58, %v3497_v9  ;;  %v1386_v63 = vpop.f32.mrb[17].mxu0 }
 0xead   :  { %v1387_v33 = vadd.f32 %v1386_v63, %v3502_v10 }
 0xeae   :  { %v1428_v3 = vsel %vm514_vm10, %v1392_v62, -inf }
 0xeaf   :  { %1429 = vmax.xlane.f32.xlu1 %v1428_v3  ;;  %v2670_v2 = vpop.f32.mrb[18].mxu0  ;;  %v1425_v39 = vsel %vm514_vm10, %v1387_v33, -inf }
 0xeb0   :  { %v1396_v35 = vpop.f32.mrb[19].mxu0  ;;  %v1402_v36 = vadd.f32 %v2670_v2, %v3509_v15 }
 0xeb1   :  { %v1397_v4 = vadd.f32 %v1396_v35, %v3515_v18 }
 0xeb2   :  { %v1434_v10 = vsel %vm514_vm10, %v1402_v36, -inf }
 0xeb3   :  { %v2673_v7 = vpop.f32.mrb[20].mxu0  ;;  %1426 = vmax.xlane.f32.xlu1 %v1425_v39  ;;  %v1431_v40 = vsel %vm514_vm10, %v1397_v4, -inf }
 0xeb4   :  { %v1406_v42 = vpop.f32.mrb[21].mxu0  ;;  %1432 = vmax.xlane.f32.xlu0 %v1431_v40  ;;  %v1412_v9 = vadd.f32 %v2673_v7, %v3524_v24 }
 0xeb5   :  { %v1407_v61 = vadd.f32 %v1406_v42, %v3531_v29 }
 0xeb6   :  { %v1440_v18 = vsel %vm514_vm10, %v1412_v9, -inf }
 0xeb7   :  { %v2676_v32 = vpop.f32.mrb[22].mxu0  ;;  %1435 = vmax.xlane.f32.xlu1 %v1434_v10  ;;  %v1437_v44 = vsel %vm514_vm10, %v1407_v61, -inf }
 0xeb8   :  { %v1416_v43 = vpop.f32.mrb[23].mxu0  ;;  %v1422_v45 = vadd.f32 %v2676_v32, %v3545_v37 }
 0xeb9   :  { %v1417_v15 = vadd.f32 %v1416_v43, %v3538_v34 }
 0xeba   :  { %v1446_v24 = vsel %vm514_vm10, %v1422_v45, -inf }
 0xebb   :  { %1441 = vmax.xlane.f32.xlu1 %v1440_v18  ;;  %v1443_v46 = vsel %vm514_vm10, %v1417_v15, -inf }
 0xebf   :  { %1438 = vmax.xlane.f32.xlu1 %v1437_v44 }
 0xec3   :  { %1444 = vmax.xlane.f32.xlu1 %v1443_v46 }
 0xec7   :  { %1447 = vmax.xlane.f32.xlu1 %v1446_v24 }
 0xf3c   :  { %v1430_v48 = vpop.xlane.xlu1 %1429 }
 0xf3d   :  { %v1450_v49 = vsub.f32 %v1392_v62, %v1430_v48 }
 0xf3f   :  { %v1459_v50 = vmul.f32 1.442695, %v1450_v49 }
 0xf40   :  { %v1427_v29 = vpop.xlane.xlu1 %1426 }
 0xf41   :  { %3083 = vpow2.f32 %v1459_v50  ;;  %v1449_v52 = vsub.f32 %v1387_v33, %v1427_v29  ;;  %v1433_v54 = vpop.xlane.xlu0 %1432 }
 0xf42   :  { %v1451_v0 = vsub.f32 %v1397_v4, %v1433_v54 }
 0xf43   :  { %v1457_v34 = vmul.f32 1.442695, %v1449_v52 }
 0xf44   :  { %v1461_v1 = vmul.f32 1.442695, %v1451_v0  ;;  %v1436_v5 = vpop.xlane.xlu1 %1435 }
 0xf45   :  { %3085 = vpow2.f32 %v1457_v34  ;;  %v1452_v6 = vsub.f32 %v1402_v36, %v1436_v5 }
 0xf46   :  { %3087 = vpow2.f32 %v1461_v1 }
 0xf47   :  { %v1463_v37 = vmul.f32 1.442695, %v1452_v6 }
 0xf48   :  { %v1442_v11 = vpop.xlane.xlu1 %1441 }
 0xf49   :  { %3089 = vpow2.f32 %v1463_v37  ;;  %v1454_v13 = vsub.f32 %v1412_v9, %v1442_v11 }
 0xf4b   :  { %v3823_v14 = vpop.eup %3083  ;;  %v1467_v21 = vmul.f32 1.442695, %v1454_v13 }
 0xf4c   :  { %v1439_v60 = vpop.xlane.xlu1 %1438  ;;  %v1476_v8 = vsel %vm514_vm10, %v3823_v14, 0.0 }
 0xf4d   :  { %3091 = vpow2.f32 %v1467_v21  ;;  %v1453_v16 = vsub.f32 %v1407_v61, %v1439_v60  ;;  %1477 = vadd.xlane.f32.xlu1 %v1476_v8  ;;  %v2299_v21 = vld [vmem:[%s4031_s7 + $0x28] sm:$0xff]  ;;  %v2300_v8 = vld [vmem:[%s4031_s7 + $0x30] sm:$0xff] }
 0xf4f   :  { %v3086_v20 = vpop.eup %3085  ;;  %v1465_v17 = vmul.f32 1.442695, %v1453_v16  ;;  %v2301_v16 = vld [vmem:[%s4031_s7 + $0x38] sm:$0xff] }
 0xf50   :  { %v1445_v19 = vpop.xlane.xlu1 %1444  ;;  %v1473_v47 = vsel %vm514_vm10, %v3086_v20, 0.0  ;;  %v3828_v23 = vpop.eup %3087 }
 0xf51   :  { %3093 = vpow2.f32 %v1465_v17  ;;  %v1455_v26 = vsub.f32 %v1417_v15, %v1445_v19  ;;  %1474 = vadd.xlane.f32.xlu1 %v1473_v47  ;;  %v1479_v57 = vsel %vm514_vm10, %v3828_v23, 0.0 }
 0xf53   :  { %v3830_v28 = vpop.eup %3089  ;;  %v1469_v31 = vmul.f32 1.442695, %v1455_v26 }
 0xf54   :  { %v1448_v55 = vpop.xlane.xlu1 %1447  ;;  %v1482_v58 = vsel %vm514_vm10, %v3830_v28, 0.0 }
 0xf55   :  { %3095 = vpow2.f32 %v1469_v31  ;;  %v1456_v62 = vsub.f32 %v1422_v45, %v1448_v55  ;;  %1480 = vadd.xlane.f32.xlu1 %v1479_v57  ;;  %1483 = vadd.xlane.f32.xlu0 %v1482_v58 }
 0xf57   :  { %v3092_v63 = vpop.eup %3091  ;;  %v1471_v33 = vmul.f32 1.442695, %v1456_v62 }
 0xf58   :  { %v1488_v3 = vsel %vm514_vm10, %v3092_v63, 0.0 }
 0xf59   :  { %3097 = vpow2.f32 %v1471_v33  ;;  %1489 = vadd.xlane.f32.xlu0 %v1488_v3 }
 0xf5b   :  { %v3094_v2 = vpop.eup %3093 }
 0xf5c   :  { %v1485_v35 = vsel %vm514_vm10, %v3094_v2, 0.0 }
 0xf5d   :  { %1486 = vadd.xlane.f32.xlu1 %v1485_v35 }
 0xf5f   :  { %v3096_v4 = vpop.eup %3095 }
 0xf60   :  { %v1491_v36 = vsel %vm514_vm10, %v3096_v4, 0.0 }
 0xf61   :  { %1492 = vadd.xlane.f32.xlu0 %v1491_v36 }
 0xf63   :  { %v3098_v39 = vpop.eup %3097 }
 0xf64   :  { %v1494_v7 = vsel %vm514_vm10, %v3098_v39, 0.0 }
 0xf65   :  { %1495 = vadd.xlane.f32.xlu0 %v1494_v7 }
 0xf6e   :  { %3019 = vrot.lane.b32.xlu1 %v3771_v12, %s3162_s1 }
 0xfda   :  { %v1478_v40 = vpop.xlane.xlu1 %1477 }
 0xfde   :  { %v1475_v42 = vpop.xlane.xlu1 %1474 }
 0xfdf   :  { %3099 = vrcp.f32 %v1475_v42 }
 0xfe0   :  { %3101 = vrcp.f32 %v1478_v40 }
 0xfe2   :  { %v1481_v9 = vpop.xlane.xlu1 %1480  ;;  %v1484_v61 = vpop.xlane.xlu0 %1483 }
 0xfe3   :  { %3103 = vrcp.f32 %v1481_v9 }
 0xfe4   :  { %3105 = vrcp.f32 %v1484_v61 }
 0xfe6   :  { %v1490_v46 = vpop.xlane.xlu0 %1489 }
 0xfe9   :  { %v3100_v10 = vpop.eup %3099 }
 0xfea   :  { %v1487_v32 = vpop.xlane.xlu1 %1486  ;;  %v1513_v43 = vmul.f32 %v3100_v10, %v3086_v20  ;;  %v3102_v48 = vpop.eup %3101  ;;  %v2942_v20 = vpack.c.bf16 %v2301_v16, %v2300_v8 }
 0xfeb   :  { %3107 = vrcp.f32 %v1487_v32  ;;  %v1514_v50 = vmul.f32 %v3102_v48, %v3823_v14  ;;  %v2298_v14 = vld [vmem:[%s4031_s7 + $0x20] sm:$0xff] }
 0xfec   :  { %2693 = vmatprep.mubr.msk.f32.mxu1 %vm514_vm10, %v1513_v43  ;;  %3109 = vrcp.f32 %v1490_v46  ;;  %v2938_v60 = vpack.c.bf16 %v2299_v21, %v2298_v14  ;;  %v2305_v43 = vld [vmem:[%s4032_s8 + $0x1] ss:$0 sm:$0xff] }
 0xfed   :  { %v3104_v49 = vpop.eup %3103 }
 0xfee   :  { %v3020_v18 = vpop.permute.xlu1 %3019  ;;  %v1493_v12 = vpop.xlane.xlu0 %1492  ;;  %v1515_v52 = vmul.f32 %v3104_v49, %v3828_v23 }
 0xfef   :  { %v3022_v15 = vunpack.i.h.bf16 %v3020_v18  ;;  %v3021_v44 = vunpack.i.l.bf16 %v3020_v18  ;;  %3111 = vrcp.f32 %v1493_v12  ;;  %v3106_v29 = vpop.eup %3105 }
 0xff0   :  { %v1516_v0 = vmul.f32 %v3106_v29, %v3830_v28 }
 0xff1   :  { %v2922_v45 = vpack.c.bf16 %v3022_v15, %v3021_v44 }
 0xff2   :  { %v1496_v24 = vpop.xlane.xlu0 %1495 }
 0xff3   :  { %2923 = vmatprep.subr.bf16.mxu1 %v2922_v45  ;;  %3113 = vrcp.f32 %v1496_v24 }
 0xff4   :  { %2925 = vmatpush3.bf16.msra.mxu1 %v2922_v45 }
 0xff5   :  { %2927 = vmatprep.subr.bf16.mxu1 %v2922_v45  ;;  %v3108_v54 = vpop.eup %3107 }
 0xff6   :  { %v3110_v34 = vpop.eup %3109  ;;  %v1517_v1 = vmul.f32 %v3108_v54, %v3094_v2  ;;  %v2310_v54 = vld [vmem:[%s4033_s9 + $0x20] sm:$0xff] }
 0xff7   :  { %v1518_v6 = vmul.f32 %v3110_v34, %v3092_v63  ;;  %v2312_v34 = vld [vmem:[%s4033_s9 + $0x30] sm:$0xff] }
 0xff8   :  { %2929 = vmatpush3.bf16.msra.mxu1 %v2922_v45 }
 0xff9   :  { %2931 = vmatprep.subr.bf16.mxu1 %v2922_v45  ;;  %v3112_v5 = vpop.eup %3111 }
 0xffa   :  { %v1519_v11 = vmul.f32 %v3112_v5, %v3096_v4  ;;  %v2313_v5 = vld [vmem:[%s4033_s9 + $0x38] sm:$0xff] }
 0xffc   :  { %2933 = vmatpush3.bf16.msra.mxu1 %v2922_v45 }
 0xffd   :  { %2935 = vmatprep.subr.bf16.mxu1 %v2922_v45  ;;  %v3114_v37 = vpop.eup %3113 }
 0xffe   :  { %v1520_v13 = vmul.f32 %v3114_v37, %v3098_v39  ;;  %v2318_v37 = vld [vmem:[%s4035_s11 + $0x80] sm:$0xff] }
0x1000   :  { %2937 = vmatpush3.bf16.msra.mxu1 %v2922_v45 }
0x1001   :  { %2939 = vmatprep.subr.bf16.mxu1 %v2938_v60 }
0x1003   :  { %2694 = vmatmul.mubr.msk.f32.vlgmr.msra.gmra.mrb[14].mxu1 %vm514_vm10, %v1514_v50 }
0x1004   :  { %2696 = vmatprep.mubr.msk.f32.mxu1 %vm514_vm10, %v1515_v52  ;;  %2941 = vmatpush3.bf16.msra.mxu1 %v2938_v60 }
0x1005   :  { %2943 = vmatprep.subr.bf16.mxu1 %v2942_v20 }
0x1007   :  { %2697 = vmatmul.mubr.msk.f32.gmra.mrb[16].mxu1 %vm514_vm10, %v1516_v0  ;;  %v2311_v0 = vld [vmem:[%s4033_s9 + $0x28] sm:$0xff] }
0x1008   :  { %2699 = vmatprep.mubr.msk.f32.mxu1 %vm514_vm10, %v1517_v1  ;;  %2945 = vmatpush3.bf16.msra.mxu1 %v2942_v20  ;;  %v2946_v1 = vpack.c.bf16 %v2311_v0, %v2310_v54 }
0x100a   :  { %2947 = vmatprep.subr.bf16.mxu1 %v2946_v1 }
0x100b   :  { %2700 = vmatmul.mubr.msk.f32.gmra.mrb[18].mxu1 %vm514_vm10, %v1518_v6  ;;  %v2950_v6 = vpack.c.bf16 %v2313_v5, %v2312_v34 }
0x100c   :  { %2702 = vmatprep.mubr.msk.f32.mxu1 %vm514_vm10, %v1519_v11  ;;  %v2319_v11 = vld [vmem:[%s4035_s11 + $0x88] sm:$0xff] }
0x100f   :  { %2703 = vmatmul.mubr.msk.f32.gmra.mrb[20].mxu1 %vm514_vm10, %v1520_v13  ;;  %v2954_v13 = vpack.c.bf16 %v2319_v11, %v2318_v37 }
0x1011   :  { %2955 = vmatprep.subr.bf16.mxu0 %v2954_v13 }
0x1012   :  { %2957 = vmatpush3.bf16.msra.mxu0 %v2954_v13 }
0x10d6   :  { %v2695_v17 = vpop.f32.mrb[14].mxu1 }
0x10d7   :  { %v1617_v19 = vpop.f32.mrb[15].mxu1  ;;  %v1657_v47 = vmul.f32 %v2695_v17, %v3591_v22 }
0x10d8   :  { %v1656_v23 = vmul.f32 %v1617_v19, %v3596_v25 }
0x10d9   :  { %v1671_v57 = vsel %vm224_vm4, %v1657_v47, 0.0 }
0x10da   :  { %v2698_v26 = vpop.f32.mrb[16].mxu1  ;;  %v1664_v62 = vsel %vm224_vm4, %v1656_v23, 0.0 }
0x10db   :  { %v1659_v28 = vmul.f32 %v2698_v26, %v3601_v27  ;;  %v1627_v31 = vpop.f32.mrb[17].mxu1 }
0x10dc   :  { %v1658_v55 = vmul.f32 %v1627_v31, %v3607_v30 }
0x10dd   :  { %v1672_v58 = vsel %vm224_vm4, %v1659_v28, 0.0 }
0x10de   :  { %v1673_v63 = vadd.f32 %v1672_v58, %v1671_v57  ;;  %v1665_v33 = vsel %vm224_vm4, %v1658_v55, 0.0  ;;  %v2701_v3 = vpop.f32.mrb[18].mxu1 }
0x10df   :  { %v1666_v2 = vadd.f32 %v1665_v33, %v1664_v62  ;;  %v1661_v22 = vmul.f32 %v2701_v3, %v3615_v38  ;;  %v1637_v25 = vpop.f32.mrb[19].mxu1  ;;  %v2308_v62 = vld [vmem:[%s4039_s15 + $0x1] ss:$0 sm:$0xff] }
0x10e0   :  { %v1660_v35 = vmul.f32 %v1637_v25, %v3622_v41  ;;  %v2309_v3 = vld [vmem:[%s4040_s16 + $0x1] ss:$0 sm:$0xff] }
0x10e1   :  { %v1674_v27 = vsel %vm224_vm4, %v1661_v22, 0.0 }
0x10e2   :  { %v1675_v4 = vadd.f32 %v1674_v27, %v1673_v63  ;;  %v1667_v30 = vsel %vm224_vm4, %v1660_v35, 0.0  ;;  %v2704_v36 = vpop.f32.mrb[20].mxu1 }
0x10e3   :  { %v1668_v39 = vadd.f32 %v1667_v30, %v1666_v2  ;;  %v1663_v7 = vmul.f32 %v2704_v36, %v3631_v51  ;;  %v1647_v40 = vpop.f32.mrb[21].mxu1  ;;  %v2320_v30 = vld [vmem:[%s4035_s11 + $0x90] sm:$0xff]  ;;  %v2321_v36 = vld [vmem:[%s4035_s11 + $0x98] sm:$0xff] }
0x10e4   :  { %v1662_v42 = vmul.f32 %v1647_v40, %v3637_v53  ;;  %v2323_v40 = vld [vmem:[%s4035_s11 + $0xa8] sm:$0xff] }
0x10e5   :  { %v1676_v9 = vsel %vm224_vm4, %v1663_v7, 0.0  ;;  %v2322_v7 = vld [vmem:[%s4035_s11 + $0xa0] sm:$0xff] }
0x10e6   :  { %v1677_v10 = vadd.f32 %v1676_v9, %v1675_v4  ;;  %v1669_v38 = vsel %vm224_vm4, %v1662_v42, 0.0  ;;  %v2962_v42 = vpack.c.bf16 %v2323_v40, %v2322_v7  ;;  %v2324_v9 = vld [vmem:[%s4035_s11 + $0xb0] sm:$0xff]  ;;  %v2113_v40 = vld [vmem:[%s4043_s19 + $0x28] sm:$0xff] }
0x10e7   :  { %v1670_v32 = vadd.f32 %v1669_v38, %v1668_v39  ;;  %v2958_v39 = vpack.c.bf16 %v2321_v36, %v2320_v30  ;;  %v2111_v30 = vld [vmem:[%s4043_s19 + $0x18] sm:$0xff]  ;;  %v2108_v36 = vld [vmem:[%s4043_s19] sm:$0xff]  ;;  %v2110_v7 = vld [vmem:[%s4043_s19 + $0x10] sm:$0xff] }
0x10e9   :  { %2713 = vmatprep.mubr.msk.f32.mxu1 %vm224_vm4, %v1670_v32  ;;  %2959 = vmatprep.subr.bf16.mxu0 %v2958_v39  ;;  %v2326_v32 = vld [vmem:[%s4035_s11 + $0xc0] sm:$0xff] }
0x10ea   :  { %2714 = vmatmul.mubr.msk.f32.vlgmr.msra.gmra.mrb[22].mxu1 %vm224_vm4, %v1677_v10  ;;  %2961 = vmatpush3.bf16.msra.mxu0 %v2958_v39  ;;  %v2325_v10 = vld [vmem:[%s4035_s11 + $0xb8] sm:$0xff] }
0x10eb   :  { %2949 = vmatpush3.bf16.msra.mxu1 %v2946_v1  ;;  %2963 = vmatprep.subr.bf16.mxu0 %v2962_v42  ;;  %v2966_v38 = vpack.c.bf16 %v2325_v10, %v2324_v9  ;;  %v3163_v9 = vmov 0.0   ;;  %v2988_v10 = vpack.c.bf16 %v2110_v7, %v2108_v36 }
0x10ec   :  { %2951 = vmatprep.subr.bf16.mxu1 %v2950_v6 }
0x10ee   :  { %2965 = vmatpush3.bf16.msra.mxu0 %v2962_v42  ;;  %v2115_v42 = vld [vmem:[%s4043_s19 + $0x38] sm:$0xff] }
0x10ef   :  { %2953 = vmatpush3.bf16.msra.mxu1 %v2950_v6  ;;  %2967 = vmatprep.subr.bf16.mxu0 %v2966_v38 }
0x10f2   :  { %2969 = vmatpush3.bf16.msra.mxu0 %v2966_v38  ;;  %v2990_v38 = vpack.c.bf16 %v2115_v42, %v2113_v40 }
0x11bd   :  { %v2715_v41 = vpop.f32.mrb[22].mxu1 }
0x11be   :  { %v1755_v61 = vpop.f32.mrb[23].mxu1  ;;  %v1765_v51 = vadd.f32 %v2715_v41, %v3741_v59  ;;  %v2327_v41 = vld [vmem:[%s4035_s11 + $0xc8] sm:$0xff] }
0x11bf   :  { %v1764_v53 = vadd.f32 %v1755_v61, %v3738_v56  ;;  %v2328_v61 = vld [vmem:[%s4035_s11 + $0xd0] sm:$0xff] }
0x11c0   :  { %v3890_v15 = vadd.f32 %v2305_v43, %v1765_v51  ;;  %v2329_v51 = vld [vmem:[%s4035_s11 + $0xd8] sm:$0xff] }
0x11c1   :  { %v3888_v18 = vadd.f32 %v2305_v43, %v1764_v53  ;;  %v2970_v43 = vpack.c.bf16 %v2327_v41, %v2326_v32  ;;  %v2330_v53 = vld [vmem:[%s4035_s11 + $0xe0] sm:$0xff]  ;;  %v2114_v41 = vld [vmem:[%s4043_s19 + $0x30] sm:$0xff] }
0x11c2   :  { %v1783_v45 = vsel %vm224_vm4, %v3890_v15, 0.0  ;;  %v2112_v32 = vld [vmem:[%s4043_s19 + $0x20] sm:$0xff] }
0x11c3   :  { %v1780_v44 = vsel %vm224_vm4, %v3888_v18, 0.0  ;;  %2971 = vmatprep.subr.bf16.mxu0 %v2970_v43 }
0x11c4   :  { %1781 = vadd.xlane.f32.xlu0 %v1780_v44  ;;  %v2974_v44 = vpack.c.bf16 %v2329_v51, %v2328_v61  ;;  %2973 = vmatpush3.bf16.msra.mxu0 %v2970_v43  ;;  %v2992_v43 = vpack.c.bf16 %v2114_v41, %v2112_v32 }
0x11c6   :  { %2975 = vmatprep.subr.bf16.mxu0 %v2974_v44 }
0x11c8   :  { %1784 = vadd.xlane.f32.xlu0 %v1783_v45  ;;  %v2331_v45 = vld [vmem:[%s4035_s11 + $0xe8] sm:$0xff]  ;;  %2977 = vmatpush3.bf16.msra.mxu0 %v2974_v44 }
0x1251   :  { %v1782_v46 = vpop.xlane.xlu0 %1781 }
0x1252   :  { %v1786_v12 = vmul.f32 0.03125, %v1782_v46  ;;  %v2978_v46 = vpack.c.bf16 %v2331_v45, %v2330_v53 }
0x1254   :  { %v1788_v24 = vsub.f32 %v3888_v18, %v1786_v12  ;;  %v2332_v12 = vld [vmem:[%s4035_s11 + $0xf0] sm:$0xff]  ;;  %2979 = vmatprep.subr.bf16.mxu0 %v2978_v46 }
0x1255   :  { %v1785_v48 = vpop.xlane.xlu0 %1784  ;;  %2981 = vmatpush3.bf16.msra.mxu0 %v2978_v46 }
0x1256   :  { %v1787_v59 = vmul.f32 0.03125, %v1785_v48  ;;  %v1790_v49 = vmul.f32 %v1788_v24, %v1788_v24  ;;  %v1806_v63 = vmul.f32 %v2308_v62, %v1788_v24  ;;  %v2333_v24 = vld [vmem:[%s4035_s11 + $0xf8] sm:$0xff] }
0x1257   :  { %v2982_v48 = vpack.c.bf16 %v2333_v24, %v2332_v12 }
0x1258   :  { %v1789_v56 = vsub.f32 %v3890_v15, %v1787_v59  ;;  %v1792_v50 = vsel %vm224_vm4, %v1790_v49, 0.0  ;;  %v2315_v59 = vld [vmem:[%s4034_s10 + $0x1] ss:$0 sm:$0xff] }
0x1259   :  { %1793 = vadd.xlane.f32.xlu1 %v1792_v50  ;;  %2983 = vmatprep.subr.bf16.mxu0 %v2982_v48 }
0x125a   :  { %v1791_v29 = vmul.f32 %v1789_v56, %v1789_v56  ;;  %v1807_v25 = vmul.f32 %v2308_v62, %v1789_v56  ;;  %2985 = vmatpush3.bf16.msra.mxu0 %v2982_v48 }
0x125c   :  { %v1795_v52 = vsel %vm224_vm4, %v1791_v29, 0.0 }
0x125d   :  { %1796 = vadd.xlane.f32.xlu0 %v1795_v52 }
0x12e6   :  { %v1794_v14 = vpop.xlane.xlu1 %1793 }
0x12e7   :  { %v1798_v21 = vmul.f32 0.03125, %v1794_v14 }
0x12e9   :  { %v1808_v60 = vadd.f32 1e-05, %v1798_v21 }
0x12ea   :  { %v1797_v8 = vpop.xlane.xlu0 %1796 }
0x12eb   :  { %3115 = vrsqrt.f32 %v1808_v60  ;;  %v1799_v16 = vmul.f32 0.03125, %v1797_v8  ;;  %vm1812_vm3 = vcmp.eq.f32.partialorder %v1808_v60, inf  ;;  %v1815_v47 = vand.u32 2147483648, %v1808_v60 }
0x12ec   :  { %vm1814_vm5 = vcmp.eq.f32.partialorder %v1808_v60, 0.0 }
0x12ed   :  { %v1809_v20 = vadd.f32 1e-05, %v1799_v16 }
0x12ef   :  { %3117 = vrsqrt.f32 %v1809_v20  ;;  %vm1819_vm6 = vcmp.eq.f32.partialorder %v1809_v20, inf  ;;  %v1822_v55 = vand.u32 2147483648, %v1809_v20  ;;  %vm1821_vm7 = vcmp.eq.f32.partialorder %v1809_v20, 0.0 }
0x12f5   :  { %v3116_v17 = vpop.eup %3115 }
0x12f6   :  { %v1811_v19 = vmul.f32 %v3116_v17, %v1808_v60 }
0x12f8   :  { %v1813_v23 = vsel %vm1812_vm3, %v1808_v60, %v1811_v19 }
0x12f9   :  { %v1816_v26 = vsel %vm1814_vm5, %v1815_v47, %v1813_v23  ;;  %v3118_v28 = vpop.eup %3117  ;;  %v2335_v47 = vld [vmem:[%s4064_s22 + $0x1] ss:$0 sm:$0xff] }
0x12fa   :  { %3119 = vrcp.f32 %v1816_v26  ;;  %v1818_v31 = vmul.f32 %v3118_v28, %v1809_v20 }
0x12fc   :  { %v1820_v57 = vsel %vm1819_vm6, %v1809_v20, %v1818_v31 }
0x12fd   :  { %v1823_v58 = vsel %vm1821_vm7, %v1822_v55, %v1820_v57 }
0x12fe   :  { %3121 = vrcp.f32 %v1823_v58 }
0x1304   :  { %v3120_v33 = vpop.eup %3119 }
0x1305   :  { %v1825_v2 = vmul.f32 %v3120_v33, %v1806_v63 }
0x1307   :  { %v1834_v22 = vadd.f32 %v2309_v3, %v1825_v2 }
0x1308   :  { %v3122_v35 = vpop.eup %3121 }
0x1309   :  { %2724 = vmatprep.mubr.msk.f32.mxu1 %vm224_vm4, %v1834_v22  ;;  %v1827_v27 = vmul.f32 %v3122_v35, %v1807_v25 }
0x130b   :  { %v1835_v4 = vadd.f32 %v2309_v3, %v1827_v27 }
0x130d   :  { %2725 = vmatmul.mubr.msk.f32.vlgmr.msra.gmra.mrb[24].mxu1 %vm224_vm4, %v1835_v4 }
0x130e   :  { %2186 = vmatprep.mubr.f32.mxu1 %v3163_v9 }
0x13e0   :  { %v2726_v49 = vpop.f32.mrb[24].mxu1 }
0x13e1   :  { %v1927_v56 = vadd.f32 %v2726_v49, %v2315_v59  ;;  %v1921_v50 = vpop.f32.mrb[25].mxu1 }
0x13e2   :  { %v1922_v29 = vadd.f32 %v2315_v59, %v1921_v50 }
0x13e3   :  { %v1933_v52 = vmul.f32 0.044715, %v1927_v56  ;;  %v1931_v20 = vmul.f32 0.5, %v1927_v56 }
0x13e4   :  { %v1932_v54 = vmul.f32 0.044715, %v1922_v29  ;;  %v1930_v8 = vmul.f32 0.5, %v1922_v29 }
0x13e5   :  { %v1935_v0 = vmul.f32 %v1933_v52, %v1927_v56 }
0x13e6   :  { %v1934_v34 = vmul.f32 %v1932_v54, %v1922_v29 }
0x13e7   :  { %v1937_v1 = vmul.f32 %v1935_v0, %v1927_v56  ;;  %v2336_v0 = vld [vmem:[%s4041_s17] ss:$0 sm:$0xff]  ;;  %s3164_s17 = smov [#allocation2]  }
0x13e8   :  { %v1936_v5 = vmul.f32 %v1934_v34, %v1922_v29  ;;  %s2208_s4 = sshll.u32 %s3164_s17, 4  ;;  %s2209_s4 = int_to_ptr.vmem [resolvable:$true] %s2208_s4 }
0x13e9   :  { %v1939_v6 = vadd.f32 %v1937_v1, %v1927_v56  ;;  %p3140_p1 = scmp.lt.s32.totalorder %s2209_s4, %s2209_s4 }
0x13ea   :  { %v1938_v37 = vadd.f32 %v1936_v5, %v1922_v29  ;;  %v2337_v5 = vld [vmem:[%s4042_s18] ss:$0 sm:$0xff]  ;;  %s3135_s18 = scalar_lea.vmem %s2209_s4, 512 }
0x13eb   :  { %v1941_v11 = vmul.f32 0.7978845, %v1939_v6  ;;  %p3136_p0 = scmp.ne.s32.totalorder %s2209_s4, %s3135_s18  ;;  %p3141_p2 = scmp.lt.s32.totalorder %s3135_s18, %s3135_s18 }
0x13ec   :  { %v1940_v13 = vmul.f32 0.7978845, %v1938_v37 }
0x13ed   :  { %3123 = vtanh.f32 %v1941_v11  ;;  %p3142_p3 = por %p3141_p2, %p3140_p1 }
0x13ee   :  { %3125 = vtanh.f32 %v1940_v13 }
0x13ef   :  { %p3143_p4 = pnand %p3142_p3, %p3136_p0 }
0x13f7   :  { %v3124_v14 = vpop.eup %3123 }
0x13f8   :  { %v3126_v21 = vpop.eup %3125  ;;  %v1945_v60 = vadd.f32 1.0, %v3124_v14 }
0x13f9   :  { %v1944_v16 = vadd.f32 1.0, %v3126_v21 }
0x13fa   :  { %v1947_v19 = vmul.f32 %v1945_v60, %v1931_v20 }
0x13fb   :  { %v1946_v17 = vmul.f32 %v1944_v16, %v1930_v8 }
0x13fd   :  { %2759 = vmatprep.mubr.f32.mxu0 %v1946_v17 }
0x13fe   :  { %2760 = vmatmul.mubr.f32.vlgmr.msra.gmra.mrb[24].mxu0 %v1947_v19 }
0x14d1   :  { %v2761_v23 = vpop.f32.mrb[24].mxu0 }
0x14d2   :  { %v2039_v26 = vpop.f32.mrb[25].mxu0  ;;  %v2045_v28 = vadd.f32 %v2761_v23, %v2335_v47 }
0x14d3   :  { %v2040_v31 = vadd.f32 %v2335_v47, %v2039_v26 }
0x14d4   :  { %v2049_v58 = vadd.f32 %v2045_v28, %v3890_v15  ;;  %v2109_v15 = vld [vmem:[%s4043_s19 + $0x8] sm:$0xff] }
0x14d5   :  { %v2048_v55 = vadd.f32 %v2040_v31, %v3888_v18  ;;  %v2986_v39 = vpack.c.bf16 %v2111_v30, %v2109_v15 }
0x14d6   :  { %v2055_v62 = vsel %vm224_vm4, %v2049_v58, 0.0 }
0x14d7   :  { %v2052_v57 = vsel %vm224_vm4, %v2048_v55, 0.0  ;;  %2987 = vmatprep.subr.bf16.mxu1 %v2986_v39 }
0x14d8   :  { %2053 = vadd.xlane.f32.xlu0 %v2052_v57  ;;  %2989 = vmatpush1.bf16.msra.mxu1 %v2988_v10 }
0x14d9   :  { %2991 = vmatprep.subr.bf16.mxu1 %v2990_v38 }
0x14dc   :  { %2056 = vadd.xlane.f32.xlu0 %v2055_v62  ;;  %2993 = vmatpush1.bf16.msra.mxu1 %v2992_v43 }
0x1565   :  { %v2054_v63 = vpop.xlane.xlu0 %2053 }
0x1566   :  { %v2058_v33 = vmul.f32 0.03125, %v2054_v63 }
0x1568   :  { %v2060_v3 = vsub.f32 %v2048_v55, %v2058_v33 }
0x1569   :  { %v2057_v2 = vpop.xlane.xlu0 %2056 }
0x156a   :  { %v2059_v22 = vmul.f32 0.03125, %v2057_v2  ;;  %v2062_v25 = vmul.f32 %v2060_v3, %v2060_v3  ;;  %v2078_v34 = vmul.f32 %v2336_v0, %v2060_v3 }
0x156c   :  { %v2061_v35 = vsub.f32 %v2049_v58, %v2059_v22  ;;  %v2064_v27 = vsel %vm224_vm4, %v2062_v25, 0.0 }
0x156d   :  { %2065 = vadd.xlane.f32.xlu0 %v2064_v27 }
0x156e   :  { %v2063_v4 = vmul.f32 %v2061_v35, %v2061_v35  ;;  %v2079_v11 = vmul.f32 %v2336_v0, %v2061_v35 }
0x1570   :  { %v2067_v18 = vsel %vm224_vm4, %v2063_v4, 0.0 }
0x1571   :  { %2068 = vadd.xlane.f32.xlu0 %v2067_v18 }
0x15fa   :  { %v2066_v61 = vpop.xlane.xlu0 %2065 }
0x15fb   :  { %v2070_v51 = vmul.f32 0.03125, %v2066_v61 }
0x15fd   :  { %v2080_v53 = vadd.f32 1e-05, %v2070_v51 }
0x15fe   :  { %v2069_v44 = vpop.xlane.xlu0 %2068 }
0x15ff   :  { %3127 = vrsqrt.f32 %v2080_v53  ;;  %v2071_v45 = vmul.f32 0.03125, %v2069_v44  ;;  %vm2084_vm8 = vcmp.eq.f32.partialorder %v2080_v53, inf  ;;  %v2087_v48 = vand.u32 2147483648, %v2080_v53 }
0x1600   :  { %vm2086_vm9 = vcmp.eq.f32.partialorder %v2080_v53, 0.0 }
0x1601   :  { %v2081_v46 = vadd.f32 1e-05, %v2071_v45 }
0x1603   :  { %3129 = vrsqrt.f32 %v2081_v46  ;;  %vm2091_vm10 = vcmp.eq.f32.partialorder %v2081_v46, inf  ;;  %v2094_v29 = vand.u32 2147483648, %v2081_v46  ;;  %vm2093_vm11 = vcmp.eq.f32.partialorder %v2081_v46, 0.0 }
0x1609   :  { %v3128_v12 = vpop.eup %3127 }
0x160a   :  { %v2083_v24 = vmul.f32 %v3128_v12, %v2080_v53 }
0x160c   :  { %v2085_v59 = vsel %vm2084_vm8, %v2080_v53, %v2083_v24 }
0x160d   :  { %v2088_v49 = vsel %vm2086_vm9, %v2087_v48, %v2085_v59  ;;  %v3130_v56 = vpop.eup %3129 }
0x160e   :  { %3131 = vrcp.f32 %v2088_v49  ;;  %v2090_v50 = vmul.f32 %v3130_v56, %v2081_v46 }
0x1610   :  { %v2092_v52 = vsel %vm2091_vm10, %v2081_v46, %v2090_v50 }
0x1611   :  { %v2095_v54 = vsel %vm2093_vm11, %v2094_v29, %v2092_v52 }
0x1612   :  { %3133 = vrcp.f32 %v2095_v54 }
0x1618   :  { %v3132_v1 = vpop.eup %3131 }
0x1619   :  { %v2097_v6 = vmul.f32 %v3132_v1, %v2078_v34 }
0x161b   :  { %v2106_v37 = vadd.f32 %v2337_v5, %v2097_v6 }
0x161c   :  { %v3134_v13 = vpop.eup %3133 }
0x161d   :  { %2338 = vmatmul.mubr.msk.f32.vlgmr.msra.gmra.mrb[26].mxu1 %vm224_vm4, %v2106_v37  ;;  %v2099_v14 = vmul.f32 %v3134_v13, %v2079_v11 }
0x161e   :  { %2192 = vmatprep.mubr.f32.mxu1 %v3163_v9 }
0x161f   :  { %v2107_v21 = vadd.f32 %v2337_v5, %v2099_v14 }
0x1621   :  { %2339 = vmatmul.mubr.msk.f32.gmra.mrb[28].mxu1 %vm224_vm4, %v2107_v21 }
0x16f0   :  { %v2188_v60 = vpop.f32.mrb[26].mxu1 }
0x16f1   :  { %2199 = vst [vmem:[#allocation2] sm:$0xff] %v2188_v60  ;;  %v2190_v8 = vpop.f32.mrb[27].mxu1 }
0x16f2   :  { %2200 = vst [vmem:[#allocation2 + $0x8] sm:$0xff] %v2190_v8 }
0x16f4   :  { %v2194_v16 = vpop.f32.mrb[28].mxu1 }
0x16f5   :  { %2201 = vst [vmem:[#allocation2 + $0x10] sm:$0xff] %v2194_v16  ;;  %v2196_v20 = vpop.f32.mrb[29].mxu1 }
0x16f6   :  { %2202 = vst [vmem:[#allocation2 + $0x18] sm:$0xff] %v2196_v20 }
0x16f7   :  { %3146 = shalt.err (!%p3143_p4)
}
0x16f8   :  { %s3147_s21 = scalar_lea.hbm %s4044_s20, 512 }
0x16f9   :  { %p3148_p5 = scmp.ne.s32.totalorder %s4044_s20, %s3147_s21  ;;  %p3151_p6 = scmp.lt.u32.totalorder %s3147_s21, %s4044_s20 }
0x16fb   :  { %p3153_p7 = pnand %p3151_p6, %p3148_p5 }
0x16fd   :  { %3156 = shalt.err (!%p3153_p7)
}
0x16fe   :  { %s3165_s22 = smov 256   ;;  %s3166_s7 = smov 16  }
0x16ff   :  { %2214 = dma.vmem_to_hbm [thread:$0]  %s2209_s4, 512, %s4044_s20, [#allocation3], %s3165_s22, %s3165_s22, %s3166_s7  }
0x1700   :  { %3157 = dma.done.wait [#allocation3], 512  }
0x1701   :  { %3158 = vsyncadd [#allocation3], 4294966784 }
0x1702   :  { %2218 = vsyncpa [#allocation3], 1 }

</bundles_post_ra>
